<compile_context>
chip_gen: v7x
topology: tpu7x:2x2x1
jax: 0.10.0
libtpu: 0.0.40
codegen_flags: <defaults>
</compile_context>

<pallas_src>
import functools

import jax
import jax.numpy as jnp
from jax.experimental import pallas as pl
from jax.experimental.pallas import tpu as pltpu


LANE = 128  # pad channel dims to multiples of 128 lanes (unmasked stores)


def _round_up(n, m):
    return ((n + m - 1) // m) * m


@functools.lru_cache(maxsize=None)
def _device_tuning():
    """(tile_cap_rows, vmem_limit_bytes) chosen per TPU generation."""
    try:
        kind = jax.devices()[0].device_kind.lower()
    except Exception:  # pragma: no cover - defensive
        kind = ""
    if "v5" in kind or "v6" in kind:
        # 128 MiB VMEM chips: bigger M tiles, generous scoped-VMEM limit.
        return 1024, 100 * 1024 * 1024
    # v7x (64 MiB / TensorCore) and unknown chips: conservative budget.
    return 512, 40 * 1024 * 1024


def _pick_tm(M, cap):
    # >= 2 grid steps whenever M allows (feeds both v7x TensorCores); rows
    # rounded to 64 (multiple of the bf16 (16,128) sublane tiling).
    half = _round_up(-(-M // 2), 64)
    return max(64, min(cap, half))


# -----------------------------------------------------------------------------
# Assumed quantizers (sources of `self_conv` / `Q_A` were not provided).
# -----------------------------------------------------------------------------
def quantize_weight(w, bitW):
    # TODO(synk): exact `self_conv` weight quantizer not provided; standard
    # DoReFa weight quantization assumed (bitW == 32 -> pass-through).
    if bitW == 32:
        return w
    n = float(2 ** bitW - 1)
    t = jnp.tanh(w)
    t = t / (2.0 * jnp.max(jnp.abs(t))) + 0.5
    return 2.0 * (jnp.round(t * n) / n) - 1.0


def quan_activations(x, bitA):
    # TODO(synk): `Q_A` source not provided; standard DoReFa activation
    # quantizer assumed (clip to [0, 1], uniform levels).  bitA == 32 -> identity.
    if bitA == 32:
        return x
    n = float(2 ** bitA - 1)
    return jnp.round(jnp.clip(x, 0.0, 1.0) * n) / n


# -----------------------------------------------------------------------------
# Kernel 1: fused bf16 matmul (+ optional ReLU) + per-tile BN statistics.
# Output y is stored bf16; stats are taken from the f32 accumulator in-kernel.
# -----------------------------------------------------------------------------
def _matmul_stats_kernel(x_ref, w_ref, y_ref, sum_ref, ssq_ref, *, apply_relu):
    y = jnp.dot(x_ref[...], w_ref[...], preferred_element_type=jnp.float32)
    if apply_relu:
        y = jnp.maximum(y, 0.0)
    y_ref[...] = y.astype(y_ref.dtype)                       # bf16 intermediate
    sum_ref[...] = jnp.sum(y, axis=0, keepdims=True)[None]   # f32 partial stats
    ssq_ref[...] = jnp.sum(y * y, axis=0, keepdims=True)[None]


def _conv_matmul_stats(xm_bf16, wm_bf16, tm, *, apply_relu):
    """xm: (M_pad, K) bf16, wm: (K, Cp) bf16 with Cp % 128 == 0, M_pad % tm == 0.
    Returns y (M_pad, Cp) bf16 and per-channel sum / sum-of-squares (1, Cp) f32."""
    M_pad, K = xm_bf16.shape
    Cp = wm_bf16.shape[1]
    nt = M_pad // tm
    vmem_limit = _device_tuning()[1]

    y, psum, pssq = pl.pallas_call(
        functools.partial(_matmul_stats_kernel, apply_relu=apply_relu),
        out_shape=(
            jax.ShapeDtypeStruct((M_pad, Cp), jnp.bfloat16),
            jax.ShapeDtypeStruct((nt, 1, Cp), jnp.float32),
            jax.ShapeDtypeStruct((nt, 1, Cp), jnp.float32),
        ),
        grid_spec=pltpu.PrefetchScalarGridSpec(
            num_scalar_prefetch=0,
            grid=(nt,),
            in_specs=[
                pl.BlockSpec((tm, K), lambda i: (i, 0)),     # activation tile
                pl.BlockSpec((K, Cp), lambda i: (0, 0)),     # weights resident
            ],
            out_specs=(
                pl.BlockSpec((tm, Cp), lambda i: (i, 0)),    # lane-dense bf16 out
                pl.BlockSpec((1, 1, Cp), lambda i: (i, 0, 0)),
                pl.BlockSpec((1, 1, Cp), lambda i: (i, 0, 0)),
            ),
        ),
        compiler_params=pltpu.CompilerParams(
            dimension_semantics=("parallel",),
            vmem_limit_bytes=vmem_limit,
        ),
    )(xm_bf16, wm_bf16)

    return y, jnp.sum(psum, axis=0), jnp.sum(pssq, axis=0)


# -----------------------------------------------------------------------------
# Kernel 2 family: folded-BN epilogues (scale/shift + residual / quant / gate /
# accumulate).  All are row-tiled, lane-dense, and memory-bound; the extra VPU
# ops ride for free under the vld/vst slots.
# -----------------------------------------------------------------------------
def _bn_kernel(y_ref, scale_ref, shift_ref, o_ref):
    # downsample: out = bn(conv1x1(x)), emitted as bf16 residual.
    o_ref[...] = (y_ref[...].astype(jnp.float32) * scale_ref[...]
                  + shift_ref[...]).astype(o_ref.dtype)


def _bn_res_quant_kernel(y_ref, res_ref, scale_ref, shift_ref,
                         out_ref, outq_ref, *, bitA):
    # conv1 epilogue: out = bn1(relu(conv1)) + residual ; out_q = Q_A(out) bf16.
    o = (y_ref[...].astype(jnp.float32) * scale_ref[...] + shift_ref[...]
         + res_ref[...].astype(jnp.float32))
    out_ref[...] = o.astype(out_ref.dtype)
    outq_ref[...] = quan_activations(o, bitA).astype(outq_ref.dtype)


def _bn_res_gate_kernel(y_ref, res_ref, scale_ref, shift_ref, gvec_ref, o_ref):
    # conv2 epilogue, first base: final = (bn2 + out) * gate / num_bases
    # (gate/num_bases already folded into scale/shift; residual scaled here).
    o_ref[...] = (y_ref[...].astype(jnp.float32) * scale_ref[...]
                  + shift_ref[...]
                  + res_ref[...].astype(jnp.float32) * gvec_ref[...])


def _bn_res_gate_acc_kernel(y_ref, res_ref, scale_ref, shift_ref, gvec_ref,
                            acc_ref, o_ref):
    # conv2 epilogue, later bases: accumulate into `final` in place (aliased).
    o_ref[...] = (acc_ref[...]
                  + y_ref[...].astype(jnp.float32) * scale_ref[...]
                  + shift_ref[...]
                  + res_ref[...].astype(jnp.float32) * gvec_ref[...])


def _epilogue_call(kernel, args, is_row, out_dtypes, aliases, M_pad, Cp, tm):
    nt = M_pad // tm
    vmem_limit = _device_tuning()[1]
    row = pl.BlockSpec((tm, Cp), lambda i: (i, 0))
    vec = pl.BlockSpec((1, Cp), lambda i: (0, 0))
    in_specs = [row if r else vec for r in is_row]
    out_shape = tuple(jax.ShapeDtypeStruct((M_pad, Cp), d) for d in out_dtypes)
    out_specs = tuple(pl.BlockSpec((tm, Cp), lambda i: (i, 0)) for _ in out_dtypes)
    if len(out_dtypes) == 1:
        out_shape, out_specs = out_shape[0], out_specs[0]
    return pl.pallas_call(
        kernel,
        out_shape=out_shape,
        grid_spec=pltpu.PrefetchScalarGridSpec(
            num_scalar_prefetch=0,
            grid=(nt,),
            in_specs=in_specs,
            out_specs=out_specs,
        ),
        compiler_params=pltpu.CompilerParams(
            dimension_semantics=("parallel",),
            vmem_limit_bytes=vmem_limit,
        ),
        input_output_aliases=aliases,
    )(*args)


# -----------------------------------------------------------------------------
# Host-side helpers: im2col (bf16), weight matrices, BN folding.
# -----------------------------------------------------------------------------
def _im2col_3x3(x_nhwc, stride):
    # TODO(synk): replace with a halo-aware in-kernel direct conv (no 9x expansion).
    N, H, W, C = x_nhwc.shape
    Ho = (H - 1) // stride + 1
    Wo = (W - 1) // stride + 1
    xp = jnp.pad(x_nhwc, ((0, 0), (1, 1), (1, 1), (0, 0)))
    cols = []
    for dy in range(3):
        for dx in range(3):
            cols.append(xp[:, dy:dy + stride * (Ho - 1) + 1:stride,
                           dx:dx + stride * (Wo - 1) + 1:stride, :])
    patches = jnp.concatenate(cols, axis=-1)               # (N, Ho, Wo, 9*C)
    return patches.reshape(N * Ho * Wo, 9 * C), Ho, Wo


def _pad_rows(xm, M_pad):
    M = xm.shape[0]
    if M_pad != M:
        xm = jnp.pad(xm, ((0, M_pad - M), (0, 0)))
    return xm


def _w3x3_matrix(w_oihw, bitW, Cp):
    Cout, Cin = w_oihw.shape[0], w_oihw.shape[1]
    wq = quantize_weight(w_oihw.astype(jnp.float32), bitW)
    wm = jnp.transpose(wq, (2, 3, 1, 0)).reshape(9 * Cin, Cout)
    if Cp != Cout:
        wm = jnp.pad(wm, ((0, 0), (0, Cp - Cout)))
    return wm.astype(jnp.bfloat16)


def _w1x1_matrix(w_oihw, bitW, Cp):
    Cout, Cin = w_oihw.shape[0], w_oihw.shape[1]
    wq = quantize_weight(w_oihw.astype(jnp.float32), bitW)
    wm = jnp.transpose(wq.reshape(Cout, Cin))
    if Cp != Cout:
        wm = jnp.pad(wm, ((0, 0), (0, Cp - Cout)))
    return wm.astype(jnp.bfloat16)


def _fold_bn(s, q, M, gamma, beta, Cout, Cp, eps):
    """Fold training-mode BatchNorm (batch stats, biased var) into scale/shift."""
    inv = 1.0 / float(M)                      # true M; padded rows contribute 0
    mean = s * inv
    var = jnp.maximum(q * inv - mean * mean, 0.0)
    gamma_p = jnp.pad(gamma.astype(jnp.float32), (0, Cp - Cout)).reshape(1, Cp)
    beta_p = jnp.pad(beta.astype(jnp.float32), (0, Cp - Cout)).reshape(1, Cp)
    scale = gamma_p * jax.lax.rsqrt(var + eps)
    shift = beta_p - mean * scale
    return scale, shift


# -----------------------------------------------------------------------------
# BasicBlock forward (NCHW in / NCHW out, channels-last + padded 2D internally)
# -----------------------------------------------------------------------------
def basic_block_forward(x_nchw, params, *, num_bases, bitW, bitA, stride,
                        has_downsample, eps=1e-5):
    x = jnp.transpose(x_nchw, (0, 2, 3, 1)).astype(jnp.float32)   # NHWC once
    N, H, W, Cin = x.shape
    Ho = (H - 1) // stride + 1
    Wo = (W - 1) // stride + 1
    Cout = params["w1"][0].shape[0]
    Cp = _round_up(Cout, LANE)
    M = N * Ho * Wo
    tile_cap, _ = _device_tuning()
    tm = _pick_tm(M, tile_cap)
    M_pad = _round_up(M, tm)

    if has_downsample:
        # TODO(synk): `downsample` is supplied externally in the original code;
        # the usual self_conv(1x1, stride, bias=False) + BatchNorm2d is assumed.
        xq = quan_activations(x, bitA).astype(jnp.bfloat16)   # quantize/cast pre-im2col
        xs = _pad_rows(xq[:, ::stride, ::stride, :].reshape(M, Cin), M_pad)
        wmd = _w1x1_matrix(params["ds_w"], bitW, Cp)
        yd, sd, qd = _conv_matmul_stats(xs, wmd, tm, apply_relu=False)
        scd, shd = _fold_bn(sd, qd, M, params["ds_gamma"], params["ds_beta"],
                            Cout, Cp, eps)
        residual = _epilogue_call(_bn_kernel, (yd, scd, shd),
                                  [True, False, False], (jnp.bfloat16,),
                                  {0: 0}, M_pad, Cp, tm)       # bf16, padded
        x_in = xq
    else:
        residual = jnp.pad(x.reshape(M, Cin).astype(jnp.bfloat16),
                           ((0, M_pad - M), (0, Cp - Cin)))
        x_in = quan_activations(x, bitA).astype(jnp.bfloat16)

    # conv1 im2col is shared across all bases (bf16 patches -> half the traffic)
    xm1, _, _ = _im2col_3x3(x_in, stride)
    xm1 = _pad_rows(xm1, M_pad)

    final = None
    for b in range(num_bases):
        # ---- conv1 + ReLU + BN (+ residual), fused Q_A for conv2 input ----
        w1 = _w3x3_matrix(params["w1"][b], bitW, Cp)
        y1, s1, q1 = _conv_matmul_stats(xm1, w1, tm, apply_relu=True)
        sc1, sh1 = _fold_bn(s1, q1, M, params["g1"][b], params["b1"][b],
                            Cout, Cp, eps)
        out, out_q = _epilogue_call(
            functools.partial(_bn_res_quant_kernel, bitA=bitA),
            (y1, residual, sc1, sh1), [True, True, False, False],
            (jnp.bfloat16, jnp.bfloat16), {0: 0}, M_pad, Cp, tm)

        # ---- conv2 + ReLU + BN, fused residual + gate + accumulate ----
        outq_nhwc = out_q[:M, :Cout].reshape(N, Ho, Wo, Cout)
        xm2, _, _ = _im2col_3x3(outq_nhwc, 1)
        xm2 = _pad_rows(xm2, M_pad)
        w2 = _w3x3_matrix(params["w2"][b], bitW, Cp)
        y2, s2, q2 = _conv_matmul_stats(xm2, w2, tm, apply_relu=True)
        sc2, sh2 = _fold_bn(s2, q2, M, params["g2"][b], params["b2"][b],
                            Cout, Cp, eps)

        g = (jnp.clip(params["mask"][b] + 0.5, 0.0, 1.0).astype(jnp.float32)
             / float(num_bases)).reshape(1, 1)                # hardtanh(.,0,1)/nb
        gvec = jnp.broadcast_to(g, (1, Cp))
        sc2g, sh2g = sc2 * g, sh2 * g
        if final is None:
            final = _epilogue_call(
                _bn_res_gate_kernel, (y2, out, sc2g, sh2g, gvec),
                [True, True, False, False, False], (jnp.float32,),
                {}, M_pad, Cp, tm)
        else:
            final = _epilogue_call(
                _bn_res_gate_acc_kernel, (y2, out, sc2g, sh2g, gvec, final),
                [True, True, False, False, False, True], (jnp.float32,),
                {5: 0}, M_pad, Cp, tm)
        # NOTE: `scales` / `filter_gate1/2` params are unused in the reference
        # forward (the filter-search branch there is commented out).

    out_nhwc = final[:M, :Cout].reshape(N, Ho, Wo, Cout)
    return jnp.transpose(out_nhwc, (0, 3, 1, 2))                 # back to NCHW


# -----------------------------------------------------------------------------
# Pure-JAX reference (mirrors the bf16 MXU inputs and bf16 intermediates so the
# check isolates the Pallas kernels; bf16 products are exact in f32).
# -----------------------------------------------------------------------------
def _b2f(t):
    return t.astype(jnp.bfloat16).astype(jnp.float32)


def _ref_conv_bn_folded(x_nhwc, w_oihw, gamma, beta, *, stride, relu, bitW, eps):
    wq = _b2f(quantize_weight(w_oihw.astype(jnp.float32), bitW))
    pad = w_oihw.shape[-1] // 2
    y = jax.lax.conv_general_dilated(
        x_nhwc, wq, window_strides=(stride, stride),
        padding=((pad, pad), (pad, pad)),
        dimension_numbers=("NHWC", "OIHW", "NHWC"),
        precision=jax.lax.Precision.HIGHEST)
    if relu:
        y = jnp.maximum(y, 0.0)
    mean = jnp.mean(y, axis=(0, 1, 2))
    var = jnp.mean(jnp.square(y - mean), axis=(0, 1, 2))        # biased
    scale = gamma.astype(jnp.float32) * jax.lax.rsqrt(var + eps)
    shift = beta.astype(jnp.float32) - mean * scale
    return _b2f(y), scale.reshape(1, 1, 1, -1), shift.reshape(1, 1, 1, -1)


def _ref_basic_block(x_nchw, params, *, num_bases, bitW, bitA, stride,
                     has_downsample, eps=1e-5):
    x = jnp.transpose(x_nchw, (0, 2, 3, 1)).astype(jnp.float32)
    if has_downsample:
        xq = _b2f(quan_activations(x, bitA))
        yd, sd, hd = _ref_conv_bn_folded(xq, params["ds_w"], params["ds_gamma"],
                                         params["ds_beta"], stride=stride,
                                         relu=False, bitW=bitW, eps=eps)
        residual = _b2f(yd * sd + hd)
        x_in = xq
    else:
        residual = _b2f(x)
        x_in = _b2f(quan_activations(x, bitA))
    final = None
    for b in range(num_bases):
        y1, s1, h1 = _ref_conv_bn_folded(x_in, params["w1"][b], params["g1"][b],
                                         params["b1"][b], stride=stride,
                                         relu=True, bitW=bitW, eps=eps)
        o = y1 * s1 + h1 + residual
        out_res = _b2f(o)
        out_q = _b2f(quan_activations(o, bitA))
        y2, s2, h2 = _ref_conv_bn_folded(out_q, params["w2"][b], params["g2"][b],
                                         params["b2"][b], stride=1,
                                         relu=True, bitW=bitW, eps=eps)
        g = jnp.clip(params["mask"][b] + 0.5, 0.0, 1.0)[0] / float(num_bases)
        contrib = y2 * (s2 * g) + h2 * g + out_res * g
        final = contrib if final is None else final + contrib
    return jnp.transpose(final, (0, 3, 1, 2))


# -----------------------------------------------------------------------------
# Test driver
# -----------------------------------------------------------------------------
def _make_params(key, *, num_bases, inplanes, planes, has_downsample):
    keys = jax.random.split(key, 7 * num_bases + 3)
    ki = iter(keys)
    p = {"w1": [], "g1": [], "b1": [], "w2": [], "g2": [], "b2": [], "mask": []}
    for _ in range(num_bases):
        p["w1"].append(jax.random.normal(next(ki), (planes, inplanes, 3, 3),
                                         jnp.float32) * 0.2)
        p["g1"].append(1.0 + 0.1 * jax.random.normal(next(ki), (planes,), jnp.float32))
        p["b1"].append(0.1 * jax.random.normal(next(ki), (planes,), jnp.float32))
        p["w2"].append(jax.random.normal(next(ki), (planes, planes, 3, 3),
                                         jnp.float32) * 0.2)
        p["g2"].append(1.0 + 0.1 * jax.random.normal(next(ki), (planes,), jnp.float32))
        p["b2"].append(0.1 * jax.random.normal(next(ki), (planes,), jnp.float32))
        p["mask"].append(jax.random.uniform(next(ki), (1,), jnp.float32))
    if has_downsample:
        p["ds_w"] = jax.random.normal(next(ki), (planes, inplanes, 1, 1),
                                      jnp.float32) * 0.2
        p["ds_gamma"] = 1.0 + 0.1 * jax.random.normal(next(ki), (planes,), jnp.float32)
        p["ds_beta"] = 0.1 * jax.random.normal(next(ki), (planes,), jnp.float32)
    return p


if __name__ == "__main__":
    key = jax.random.PRNGKey(0)
    N, H, W = 2, 16, 16
    num_bases, bitW, bitA = 2, 4, 32

    configs = [
        dict(name="downsample", inplanes=4, planes=8, stride=2, has_downsample=True),
        dict(name="identity",   inplanes=8, planes=8, stride=1, has_downsample=False),
    ]

    for idx, cfg in enumerate(configs):
        kx, kp = jax.random.split(jax.random.fold_in(key, idx))
        x = jax.random.normal(kx, (N, cfg["inplanes"], H, W), dtype=jnp.float32)
        params = _make_params(kp, num_bases=num_bases, inplanes=cfg["inplanes"],
                              planes=cfg["planes"],
                              has_downsample=cfg["has_downsample"])

        fwd = jax.jit(functools.partial(
            basic_block_forward, num_bases=num_bases, bitW=bitW, bitA=bitA,
            stride=cfg["stride"], has_downsample=cfg["has_downsample"]))
        out = jax.block_until_ready(fwd(x, params))

        ref = _ref_basic_block(x, params, num_bases=num_bases, bitW=bitW,
                               bitA=bitA, stride=cfg["stride"],
                               has_downsample=cfg["has_downsample"])

        Ho = (H - 1) // cfg["stride"] + 1
        assert out.shape == (N, cfg["planes"], Ho, Ho), out.shape
        max_err = float(jnp.max(jnp.abs(out - ref)))
        rel_err = float(jnp.linalg.norm(out - ref) /
                        (jnp.linalg.norm(ref) + 1e-6))
        assert max_err < 5e-2 and rel_err < 5e-3, (cfg["name"], max_err, rel_err)

    print("KERNEL_OK")
</pallas_src>

<mosaic_0001>
module attributes {stable_mosaic.version = 11 : i64} {
  func.func @_matmul_stats_kernel(%arg0: i32, %arg1: memref<64x36xbf16, #tpu.memory_space<vmem>>, %arg2: memref<36x128xbf16, #tpu.memory_space<vmem>>, %arg3: memref<64x128xbf16, #tpu.memory_space<vmem>>, %arg4: memref<1x1x128xf32, #tpu.memory_space<vmem>>, %arg5: memref<1x1x128xf32, #tpu.memory_space<vmem>>) attributes {dimension_semantics = [#tpu.dimension_semantics<parallel>], iteration_bounds = array<i64: 2>, scalar_prefetch = 0 : i64, scratch_operands = 0 : i64, tpu.core_type = #tpu.core_type<tc>, window_params = [{transform_indices = @transform_0, window_bounds = array<i64: 64, 36>}, {pipeline_mode = #tpu.pipeline_mode<synchronous>, transform_indices = @transform_1, window_bounds = array<i64: 36, 128>}, {transform_indices = @transform_2, window_bounds = array<i64: 64, 128>}, {transform_indices = @transform_3, window_bounds = array<i64: 1, 1, 128>}, {transform_indices = @transform_4, window_bounds = array<i64: 1, 1, 128>}]} {
    %c0 = arith.constant 0 : index
    %c0_0 = arith.constant 0 : index
    %0 = vector.load %arg1[%c0, %c0_0] : memref<64x36xbf16, #tpu.memory_space<vmem>>, vector<64x36xbf16>
    %c0_1 = arith.constant 0 : index
    %c0_2 = arith.constant 0 : index
    %1 = vector.load %arg2[%c0_1, %c0_2] : memref<36x128xbf16, #tpu.memory_space<vmem>>, vector<36x128xbf16>
    %cst = arith.constant dense<0.000000e+00> : vector<64x128xf32>
    %2 = tpu.matmul %0, %1, %cst {dimension_numbers = #tpu.dot_dimension_numbers<[1], [0], [0], [1], [0, 0, 1, 1], [], []>} : vector<64x36xbf16>, vector<36x128xbf16>, vector<64x128xf32> -> vector<64x128xf32>
    %cst_3 = arith.constant 0.000000e+00 : f32
    %3 = vector.broadcast %cst_3 : f32 to vector<64x128xf32>
    %4 = arith.maximumf %2, %3 : vector<64x128xf32>
    %5 = arith.truncf %4 : vector<64x128xf32> to vector<64x128xbf16>
    %c0_4 = arith.constant 0 : index
    %c0_5 = arith.constant 0 : index
    %6 = vector.load %arg3[%c0_4, %c0_5] : memref<64x128xbf16, #tpu.memory_space<vmem>>, vector<64x128xbf16>
    tpu.vector_store %arg3[%c0_4, %c0_5], %5 {strides = array<i32>} : memref<64x128xbf16, #tpu.memory_space<vmem>>, vector<64x128xbf16>,
    %cst_6 = arith.constant dense<0.000000e+00> : vector<128xf32>
    %7 = vector.multi_reduction <add>, %4, %cst_6 [0] : vector<64x128xf32> to vector<128xf32>
    %8 = vector.shape_cast %7 : vector<128xf32> to vector<1x128xf32>
    %9 = vector.shape_cast %8 : vector<1x128xf32> to vector<1x1x128xf32>
    %c0_7 = arith.constant 0 : index
    %c0_8 = arith.constant 0 : index
    %c0_9 = arith.constant 0 : index
    %10 = vector.load %arg4[%c0_7, %c0_8, %c0_9] : memref<1x1x128xf32, #tpu.memory_space<vmem>>, vector<1x1x128xf32>
    tpu.vector_store %arg4[%c0_7, %c0_8, %c0_9], %9 {strides = array<i32>} : memref<1x1x128xf32, #tpu.memory_space<vmem>>, vector<1x1x128xf32>,
    %11 = arith.mulf %4, %4 : vector<64x128xf32>
    %cst_10 = arith.constant dense<0.000000e+00> : vector<128xf32>
    %12 = vector.multi_reduction <add>, %11, %cst_10 [0] : vector<64x128xf32> to vector<128xf32>
    %13 = vector.shape_cast %12 : vector<128xf32> to vector<1x128xf32>
    %14 = vector.shape_cast %13 : vector<1x128xf32> to vector<1x1x128xf32>
    %c0_11 = arith.constant 0 : index
    %c0_12 = arith.constant 0 : index
    %c0_13 = arith.constant 0 : index
    %15 = vector.load %arg5[%c0_11, %c0_12, %c0_13] : memref<1x1x128xf32, #tpu.memory_space<vmem>>, vector<1x1x128xf32>
    tpu.vector_store %arg5[%c0_11, %c0_12, %c0_13], %14 {strides = array<i32>} : memref<1x1x128xf32, #tpu.memory_space<vmem>>, vector<1x1x128xf32>,
    return
  }
  func.func @transform_0(%arg0: i32) -> (i32, i32) {
    %c0_i32 = arith.constant 0 : i32
    %c0_i32_0 = arith.constant 0 : i32
    return %arg0, %c0_i32 : i32, i32
  }
  func.func @transform_1(%arg0: i32) -> (i32, i32) {
    %c0_i32 = arith.constant 0 : i32
    %c0_i32_0 = arith.constant 0 : i32
    %c0_i32_1 = arith.constant 0 : i32
    return %c0_i32, %c0_i32_0 : i32, i32
  }
  func.func @transform_2(%arg0: i32) -> (i32, i32) {
    %c0_i32 = arith.constant 0 : i32
    %c0_i32_0 = arith.constant 0 : i32
    return %arg0, %c0_i32 : i32, i32
  }
  func.func @transform_3(%arg0: i32) -> (i32, i32, i32) {
    %c0_i32 = arith.constant 0 : i32
    %c0_i32_0 = arith.constant 0 : i32
    %c0_i32_1 = arith.constant 0 : i32
    return %arg0, %c0_i32, %c0_i32_0 : i32, i32, i32
  }
  func.func @transform_4(%arg0: i32) -> (i32, i32, i32) {
    %c0_i32 = arith.constant 0 : i32
    %c0_i32_0 = arith.constant 0 : i32
    %c0_i32_1 = arith.constant 0 : i32
    return %arg0, %c0_i32, %c0_i32_0 : i32, i32, i32
  }
}

module attributes {stable_mosaic.version = 11 : i64} {
  func.func @_matmul_stats_kernel(%arg0: i32, %arg1: memref<64x4xbf16, #tpu.memory_space<vmem>>, %arg2: memref<4x128xbf16, #tpu.memory_space<vmem>>, %arg3: memref<64x128xbf16, #tpu.memory_space<vmem>>, %arg4: memref<1x1x128xf32, #tpu.memory_space<vmem>>, %arg5: memref<1x1x128xf32, #tpu.memory_space<vmem>>) attributes {dimension_semantics = [#tpu.dimension_semantics<parallel>], iteration_bounds = array<i64: 2>, scalar_prefetch = 0 : i64, scratch_operands = 0 : i64, tpu.core_type = #tpu.core_type<tc>, window_params = [{transform_indices = @transform_0, window_bounds = array<i64: 64, 4>}, {pipeline_mode = #tpu.pipeline_mode<synchronous>, transform_indices = @transform_1, window_bounds = array<i64: 4, 128>}, {transform_indices = @transform_2, window_bounds = array<i64: 64, 128>}, {transform_indices = @transform_3, window_bounds = array<i64: 1, 1, 128>}, {transform_indices = @transform_4, window_bounds = array<i64: 1, 1, 128>}]} {
    %c0 = arith.constant 0 : index
    %c0_0 = arith.constant 0 : index
    %0 = vector.load %arg1[%c0, %c0_0] : memref<64x4xbf16, #tpu.memory_space<vmem>>, vector<64x4xbf16>
    %c0_1 = arith.constant 0 : index
    %c0_2 = arith.constant 0 : index
    %1 = vector.load %arg2[%c0_1, %c0_2] : memref<4x128xbf16, #tpu.memory_space<vmem>>, vector<4x128xbf16>
    %cst = arith.constant dense<0.000000e+00> : vector<64x128xf32>
    %2 = tpu.matmul %0, %1, %cst {dimension_numbers = #tpu.dot_dimension_numbers<[1], [0], [0], [1], [0, 0, 1, 1], [], []>} : vector<64x4xbf16>, vector<4x128xbf16>, vector<64x128xf32> -> vector<64x128xf32>
    %3 = arith.truncf %2 : vector<64x128xf32> to vector<64x128xbf16>
    %c0_3 = arith.constant 0 : index
    %c0_4 = arith.constant 0 : index
    %4 = vector.load %arg3[%c0_3, %c0_4] : memref<64x128xbf16, #tpu.memory_space<vmem>>, vector<64x128xbf16>
    tpu.vector_store %arg3[%c0_3, %c0_4], %3 {strides = array<i32>} : memref<64x128xbf16, #tpu.memory_space<vmem>>, vector<64x128xbf16>,
    %cst_5 = arith.constant dense<0.000000e+00> : vector<128xf32>
    %5 = vector.multi_reduction <add>, %2, %cst_5 [0] : vector<64x128xf32> to vector<128xf32>
    %6 = vector.shape_cast %5 : vector<128xf32> to vector<1x128xf32>
    %7 = vector.shape_cast %6 : vector<1x128xf32> to vector<1x1x128xf32>
    %c0_6 = arith.constant 0 : index
    %c0_7 = arith.constant 0 : index
    %c0_8 = arith.constant 0 : index
    %8 = vector.load %arg4[%c0_6, %c0_7, %c0_8] : memref<1x1x128xf32, #tpu.memory_space<vmem>>, vector<1x1x128xf32>
    tpu.vector_store %arg4[%c0_6, %c0_7, %c0_8], %7 {strides = array<i32>} : memref<1x1x128xf32, #tpu.memory_space<vmem>>, vector<1x1x128xf32>,
    %9 = arith.mulf %2, %2 : vector<64x128xf32>
    %cst_9 = arith.constant dense<0.000000e+00> : vector<128xf32>
    %10 = vector.multi_reduction <add>, %9, %cst_9 [0] : vector<64x128xf32> to vector<128xf32>
    %11 = vector.shape_cast %10 : vector<128xf32> to vector<1x128xf32>
    %12 = vector.shape_cast %11 : vector<1x128xf32> to vector<1x1x128xf32>
    %c0_10 = arith.constant 0 : index
    %c0_11 = arith.constant 0 : index
    %c0_12 = arith.constant 0 : index
    %13 = vector.load %arg5[%c0_10, %c0_11, %c0_12] : memref<1x1x128xf32, #tpu.memory_space<vmem>>, vector<1x1x128xf32>
    tpu.vector_store %arg5[%c0_10, %c0_11, %c0_12], %12 {strides = array<i32>} : memref<1x1x128xf32, #tpu.memory_space<vmem>>, vector<1x1x128xf32>,
    return
  }
  func.func @transform_0(%arg0: i32) -> (i32, i32) {
    %c0_i32 = arith.constant 0 : i32
    %c0_i32_0 = arith.constant 0 : i32
    return %arg0, %c0_i32 : i32, i32
  }
  func.func @transform_1(%arg0: i32) -> (i32, i32) {
    %c0_i32 = arith.constant 0 : i32
    %c0_i32_0 = arith.constant 0 : i32
    %c0_i32_1 = arith.constant 0 : i32
    return %c0_i32, %c0_i32_0 : i32, i32
  }
  func.func @transform_2(%arg0: i32) -> (i32, i32) {
    %c0_i32 = arith.constant 0 : i32
    %c0_i32_0 = arith.constant 0 : i32
    return %arg0, %c0_i32 : i32, i32
  }
  func.func @transform_3(%arg0: i32) -> (i32, i32, i32) {
    %c0_i32 = arith.constant 0 : i32
    %c0_i32_0 = arith.constant 0 : i32
    %c0_i32_1 = arith.constant 0 : i32
    return %arg0, %c0_i32, %c0_i32_0 : i32, i32, i32
  }
  func.func @transform_4(%arg0: i32) -> (i32, i32, i32) {
    %c0_i32 = arith.constant 0 : i32
    %c0_i32_0 = arith.constant 0 : i32
    %c0_i32_1 = arith.constant 0 : i32
    return %arg0, %c0_i32, %c0_i32_0 : i32, i32, i32
  }
}

module attributes {stable_mosaic.version = 11 : i64} {
  func.func @_bn_kernel(%arg0: i32, %arg1: memref<64x128xbf16, #tpu.memory_space<vmem>>, %arg2: memref<1x128xf32, #tpu.memory_space<vmem>>, %arg3: memref<1x128xf32, #tpu.memory_space<vmem>>, %arg4: memref<64x128xbf16, #tpu.memory_space<vmem>>) attributes {dimension_semantics = [#tpu.dimension_semantics<parallel>], iteration_bounds = array<i64: 2>, scalar_prefetch = 0 : i64, scratch_operands = 0 : i64, tpu.core_type = #tpu.core_type<tc>, window_params = [{transform_indices = @transform_0, window_bounds = array<i64: 64, 128>}, {pipeline_mode = #tpu.pipeline_mode<synchronous>, transform_indices = @transform_1, window_bounds = array<i64: 1, 128>}, {pipeline_mode = #tpu.pipeline_mode<synchronous>, transform_indices = @transform_2, window_bounds = array<i64: 1, 128>}, {transform_indices = @transform_3, window_bounds = array<i64: 64, 128>}]} {
    %c0 = arith.constant 0 : index
    %c0_0 = arith.constant 0 : index
    %0 = vector.load %arg1[%c0, %c0_0] : memref<64x128xbf16, #tpu.memory_space<vmem>>, vector<64x128xbf16>
    %1 = arith.extf %0 : vector<64x128xbf16> to vector<64x128xf32>
    %c0_1 = arith.constant 0 : index
    %c0_2 = arith.constant 0 : index
    %2 = vector.load %arg2[%c0_1, %c0_2] : memref<1x128xf32, #tpu.memory_space<vmem>>, vector<1x128xf32>
    %3 = vector.broadcast %2 : vector<1x128xf32> to vector<64x128xf32>
    %4 = arith.mulf %1, %3 : vector<64x128xf32>
    %c0_3 = arith.constant 0 : index
    %c0_4 = arith.constant 0 : index
    %5 = vector.load %arg3[%c0_3, %c0_4] : memref<1x128xf32, #tpu.memory_space<vmem>>, vector<1x128xf32>
    %6 = vector.broadcast %5 : vector<1x128xf32> to vector<64x128xf32>
    %7 = arith.addf %4, %6 : vector<64x128xf32>
    %8 = arith.truncf %7 : vector<64x128xf32> to vector<64x128xbf16>
    %c0_5 = arith.constant 0 : index
    %c0_6 = arith.constant 0 : index
    %9 = vector.load %arg4[%c0_5, %c0_6] : memref<64x128xbf16, #tpu.memory_space<vmem>>, vector<64x128xbf16>
    tpu.vector_store %arg4[%c0_5, %c0_6], %8 {strides = array<i32>} : memref<64x128xbf16, #tpu.memory_space<vmem>>, vector<64x128xbf16>,
    return
  }
  func.func @transform_0(%arg0: i32) -> (i32, i32) {
    %c0_i32 = arith.constant 0 : i32
    %c0_i32_0 = arith.constant 0 : i32
    return %arg0, %c0_i32 : i32, i32
  }
  func.func @transform_1(%arg0: i32) -> (i32, i32) {
    %c0_i32 = arith.constant 0 : i32
    %c0_i32_0 = arith.constant 0 : i32
    %c0_i32_1 = arith.constant 0 : i32
    return %c0_i32, %c0_i32_0 : i32, i32
  }
  func.func @transform_2(%arg0: i32) -> (i32, i32) {
    %c0_i32 = arith.constant 0 : i32
    %c0_i32_0 = arith.constant 0 : i32
    %c0_i32_1 = arith.constant 0 : i32
    return %c0_i32, %c0_i32_0 : i32, i32
  }
  func.func @transform_3(%arg0: i32) -> (i32, i32) {
    %c0_i32 = arith.constant 0 : i32
    %c0_i32_0 = arith.constant 0 : i32
    return %arg0, %c0_i32 : i32, i32
  }
}

module attributes {stable_mosaic.version = 11 : i64} {
  func.func @_bn_res_quant_kernel(%arg0: i32, %arg1: memref<64x128xbf16, #tpu.memory_space<vmem>>, %arg2: memref<64x128xbf16, #tpu.memory_space<vmem>>, %arg3: memref<1x128xf32, #tpu.memory_space<vmem>>, %arg4: memref<1x128xf32, #tpu.memory_space<vmem>>, %arg5: memref<64x128xbf16, #tpu.memory_space<vmem>>, %arg6: memref<64x128xbf16, #tpu.memory_space<vmem>>) attributes {dimension_semantics = [#tpu.dimension_semantics<parallel>], iteration_bounds = array<i64: 2>, scalar_prefetch = 0 : i64, scratch_operands = 0 : i64, tpu.core_type = #tpu.core_type<tc>, window_params = [{transform_indices = @transform_0, window_bounds = array<i64: 64, 128>}, {transform_indices = @transform_1, window_bounds = array<i64: 64, 128>}, {pipeline_mode = #tpu.pipeline_mode<synchronous>, transform_indices = @transform_2, window_bounds = array<i64: 1, 128>}, {pipeline_mode = #tpu.pipeline_mode<synchronous>, transform_indices = @transform_3, window_bounds = array<i64: 1, 128>}, {transform_indices = @transform_4, window_bounds = array<i64: 64, 128>}, {transform_indices = @transform_5, window_bounds = array<i64: 64, 128>}]} {
    %c0 = arith.constant 0 : index
    %c0_0 = arith.constant 0 : index
    %0 = vector.load %arg1[%c0, %c0_0] : memref<64x128xbf16, #tpu.memory_space<vmem>>, vector<64x128xbf16>
    %1 = arith.extf %0 : vector<64x128xbf16> to vector<64x128xf32>
    %c0_1 = arith.constant 0 : index
    %c0_2 = arith.constant 0 : index
    %2 = vector.load %arg3[%c0_1, %c0_2] : memref<1x128xf32, #tpu.memory_space<vmem>>, vector<1x128xf32>
    %3 = vector.broadcast %2 : vector<1x128xf32> to vector<64x128xf32>
    %4 = arith.mulf %1, %3 : vector<64x128xf32>
    %c0_3 = arith.constant 0 : index
    %c0_4 = arith.constant 0 : index
    %5 = vector.load %arg4[%c0_3, %c0_4] : memref<1x128xf32, #tpu.memory_space<vmem>>, vector<1x128xf32>
    %6 = vector.broadcast %5 : vector<1x128xf32> to vector<64x128xf32>
    %7 = arith.addf %4, %6 : vector<64x128xf32>
    %c0_5 = arith.constant 0 : index
    %c0_6 = arith.constant 0 : index
    %8 = vector.load %arg2[%c0_5, %c0_6] : memref<64x128xbf16, #tpu.memory_space<vmem>>, vector<64x128xbf16>
    %9 = arith.extf %8 : vector<64x128xbf16> to vector<64x128xf32>
    %10 = arith.addf %7, %9 : vector<64x128xf32>
    %11 = arith.truncf %10 : vector<64x128xf32> to vector<64x128xbf16>
    %c0_7 = arith.constant 0 : index
    %c0_8 = arith.constant 0 : index
    %12 = vector.load %arg5[%c0_7, %c0_8] : memref<64x128xbf16, #tpu.memory_space<vmem>>, vector<64x128xbf16>
    tpu.vector_store %arg5[%c0_7, %c0_8], %11 {strides = array<i32>} : memref<64x128xbf16, #tpu.memory_space<vmem>>, vector<64x128xbf16>,
    %13 = arith.truncf %10 : vector<64x128xf32> to vector<64x128xbf16>
    %c0_9 = arith.constant 0 : index
    %c0_10 = arith.constant 0 : index
    %14 = vector.load %arg6[%c0_9, %c0_10] : memref<64x128xbf16, #tpu.memory_space<vmem>>, vector<64x128xbf16>
    tpu.vector_store %arg6[%c0_9, %c0_10], %13 {strides = array<i32>} : memref<64x128xbf16, #tpu.memory_space<vmem>>, vector<64x128xbf16>,
    return
  }
  func.func @transform_0(%arg0: i32) -> (i32, i32) {
    %c0_i32 = arith.constant 0 : i32
    %c0_i32_0 = arith.constant 0 : i32
    return %arg0, %c0_i32 : i32, i32
  }
  func.func @transform_1(%arg0: i32) -> (i32, i32) {
    %c0_i32 = arith.constant 0 : i32
    %c0_i32_0 = arith.constant 0 : i32
    return %arg0, %c0_i32 : i32, i32
  }
  func.func @transform_2(%arg0: i32) -> (i32, i32) {
    %c0_i32 = arith.constant 0 : i32
    %c0_i32_0 = arith.constant 0 : i32
    %c0_i32_1 = arith.constant 0 : i32
    return %c0_i32, %c0_i32_0 : i32, i32
  }
  func.func @transform_3(%arg0: i32) -> (i32, i32) {
    %c0_i32 = arith.constant 0 : i32
    %c0_i32_0 = arith.constant 0 : i32
    %c0_i32_1 = arith.constant 0 : i32
    return %c0_i32, %c0_i32_0 : i32, i32
  }
  func.func @transform_4(%arg0: i32) -> (i32, i32) {
    %c0_i32 = arith.constant 0 : i32
    %c0_i32_0 = arith.constant 0 : i32
    return %arg0, %c0_i32 : i32, i32
  }
  func.func @transform_5(%arg0: i32) -> (i32, i32) {
    %c0_i32 = arith.constant 0 : i32
    %c0_i32_0 = arith.constant 0 : i32
    return %arg0, %c0_i32 : i32, i32
  }
}

module attributes {stable_mosaic.version = 11 : i64} {
  func.func @_matmul_stats_kernel(%arg0: i32, %arg1: memref<64x72xbf16, #tpu.memory_space<vmem>>, %arg2: memref<72x128xbf16, #tpu.memory_space<vmem>>, %arg3: memref<64x128xbf16, #tpu.memory_space<vmem>>, %arg4: memref<1x1x128xf32, #tpu.memory_space<vmem>>, %arg5: memref<1x1x128xf32, #tpu.memory_space<vmem>>) attributes {dimension_semantics = [#tpu.dimension_semantics<parallel>], iteration_bounds = array<i64: 2>, scalar_prefetch = 0 : i64, scratch_operands = 0 : i64, tpu.core_type = #tpu.core_type<tc>, window_params = [{transform_indices = @transform_0, window_bounds = array<i64: 64, 72>}, {pipeline_mode = #tpu.pipeline_mode<synchronous>, transform_indices = @transform_1, window_bounds = array<i64: 72, 128>}, {transform_indices = @transform_2, window_bounds = array<i64: 64, 128>}, {transform_indices = @transform_3, window_bounds = array<i64: 1, 1, 128>}, {transform_indices = @transform_4, window_bounds = array<i64: 1, 1, 128>}]} {
    %c0 = arith.constant 0 : index
    %c0_0 = arith.constant 0 : index
    %0 = vector.load %arg1[%c0, %c0_0] : memref<64x72xbf16, #tpu.memory_space<vmem>>, vector<64x72xbf16>
    %c0_1 = arith.constant 0 : index
    %c0_2 = arith.constant 0 : index
    %1 = vector.load %arg2[%c0_1, %c0_2] : memref<72x128xbf16, #tpu.memory_space<vmem>>, vector<72x128xbf16>
    %cst = arith.constant dense<0.000000e+00> : vector<64x128xf32>
    %2 = tpu.matmul %0, %1, %cst {dimension_numbers = #tpu.dot_dimension_numbers<[1], [0], [0], [1], [0, 0, 1, 1], [], []>} : vector<64x72xbf16>, vector<72x128xbf16>, vector<64x128xf32> -> vector<64x128xf32>
    %cst_3 = arith.constant 0.000000e+00 : f32
    %3 = vector.broadcast %cst_3 : f32 to vector<64x128xf32>
    %4 = arith.maximumf %2, %3 : vector<64x128xf32>
    %5 = arith.truncf %4 : vector<64x128xf32> to vector<64x128xbf16>
    %c0_4 = arith.constant 0 : index
    %c0_5 = arith.constant 0 : index
    %6 = vector.load %arg3[%c0_4, %c0_5] : memref<64x128xbf16, #tpu.memory_space<vmem>>, vector<64x128xbf16>
    tpu.vector_store %arg3[%c0_4, %c0_5], %5 {strides = array<i32>} : memref<64x128xbf16, #tpu.memory_space<vmem>>, vector<64x128xbf16>,
    %cst_6 = arith.constant dense<0.000000e+00> : vector<128xf32>
    %7 = vector.multi_reduction <add>, %4, %cst_6 [0] : vector<64x128xf32> to vector<128xf32>
    %8 = vector.shape_cast %7 : vector<128xf32> to vector<1x128xf32>
    %9 = vector.shape_cast %8 : vector<1x128xf32> to vector<1x1x128xf32>
    %c0_7 = arith.constant 0 : index
    %c0_8 = arith.constant 0 : index
    %c0_9 = arith.constant 0 : index
    %10 = vector.load %arg4[%c0_7, %c0_8, %c0_9] : memref<1x1x128xf32, #tpu.memory_space<vmem>>, vector<1x1x128xf32>
    tpu.vector_store %arg4[%c0_7, %c0_8, %c0_9], %9 {strides = array<i32>} : memref<1x1x128xf32, #tpu.memory_space<vmem>>, vector<1x1x128xf32>,
    %11 = arith.mulf %4, %4 : vector<64x128xf32>
    %cst_10 = arith.constant dense<0.000000e+00> : vector<128xf32>
    %12 = vector.multi_reduction <add>, %11, %cst_10 [0] : vector<64x128xf32> to vector<128xf32>
    %13 = vector.shape_cast %12 : vector<128xf32> to vector<1x128xf32>
    %14 = vector.shape_cast %13 : vector<1x128xf32> to vector<1x1x128xf32>
    %c0_11 = arith.constant 0 : index
    %c0_12 = arith.constant 0 : index
    %c0_13 = arith.constant 0 : index
    %15 = vector.load %arg5[%c0_11, %c0_12, %c0_13] : memref<1x1x128xf32, #tpu.memory_space<vmem>>, vector<1x1x128xf32>
    tpu.vector_store %arg5[%c0_11, %c0_12, %c0_13], %14 {strides = array<i32>} : memref<1x1x128xf32, #tpu.memory_space<vmem>>, vector<1x1x128xf32>,
    return
  }
  func.func @transform_0(%arg0: i32) -> (i32, i32) {
    %c0_i32 = arith.constant 0 : i32
    %c0_i32_0 = arith.constant 0 : i32
    return %arg0, %c0_i32 : i32, i32
  }
  func.func @transform_1(%arg0: i32) -> (i32, i32) {
    %c0_i32 = arith.constant 0 : i32
    %c0_i32_0 = arith.constant 0 : i32
    %c0_i32_1 = arith.constant 0 : i32
    return %c0_i32, %c0_i32_0 : i32, i32
  }
  func.func @transform_2(%arg0: i32) -> (i32, i32) {
    %c0_i32 = arith.constant 0 : i32
    %c0_i32_0 = arith.constant 0 : i32
    return %arg0, %c0_i32 : i32, i32
  }
  func.func @transform_3(%arg0: i32) -> (i32, i32, i32) {
    %c0_i32 = arith.constant 0 : i32
    %c0_i32_0 = arith.constant 0 : i32
    %c0_i32_1 = arith.constant 0 : i32
    return %arg0, %c0_i32, %c0_i32_0 : i32, i32, i32
  }
  func.func @transform_4(%arg0: i32) -> (i32, i32, i32) {
    %c0_i32 = arith.constant 0 : i32
    %c0_i32_0 = arith.constant 0 : i32
    %c0_i32_1 = arith.constant 0 : i32
    return %arg0, %c0_i32, %c0_i32_0 : i32, i32, i32
  }
}

module attributes {stable_mosaic.version = 11 : i64} {
  func.func @_bn_res_gate_kernel(%arg0: i32, %arg1: memref<64x128xbf16, #tpu.memory_space<vmem>>, %arg2: memref<64x128xbf16, #tpu.memory_space<vmem>>, %arg3: memref<1x128xf32, #tpu.memory_space<vmem>>, %arg4: memref<1x128xf32, #tpu.memory_space<vmem>>, %arg5: memref<1x128xf32, #tpu.memory_space<vmem>>, %arg6: memref<64x128xf32, #tpu.memory_space<vmem>>) attributes {dimension_semantics = [#tpu.dimension_semantics<parallel>], iteration_bounds = array<i64: 2>, scalar_prefetch = 0 : i64, scratch_operands = 0 : i64, tpu.core_type = #tpu.core_type<tc>, window_params = [{transform_indices = @transform_0, window_bounds = array<i64: 64, 128>}, {transform_indices = @transform_1, window_bounds = array<i64: 64, 128>}, {pipeline_mode = #tpu.pipeline_mode<synchronous>, transform_indices = @transform_2, window_bounds = array<i64: 1, 128>}, {pipeline_mode = #tpu.pipeline_mode<synchronous>, transform_indices = @transform_3, window_bounds = array<i64: 1, 128>}, {pipeline_mode = #tpu.pipeline_mode<synchronous>, transform_indices = @transform_4, window_bounds = array<i64: 1, 128>}, {transform_indices = @transform_5, window_bounds = array<i64: 64, 128>}]} {
    %c0 = arith.constant 0 : index
    %c0_0 = arith.constant 0 : index
    %0 = vector.load %arg1[%c0, %c0_0] : memref<64x128xbf16, #tpu.memory_space<vmem>>, vector<64x128xbf16>
    %1 = arith.extf %0 : vector<64x128xbf16> to vector<64x128xf32>
    %c0_1 = arith.constant 0 : index
    %c0_2 = arith.constant 0 : index
    %2 = vector.load %arg3[%c0_1, %c0_2] : memref<1x128xf32, #tpu.memory_space<vmem>>, vector<1x128xf32>
    %3 = vector.broadcast %2 : vector<1x128xf32> to vector<64x128xf32>
    %4 = arith.mulf %1, %3 : vector<64x128xf32>
    %c0_3 = arith.constant 0 : index
    %c0_4 = arith.constant 0 : index
    %5 = vector.load %arg4[%c0_3, %c0_4] : memref<1x128xf32, #tpu.memory_space<vmem>>, vector<1x128xf32>
    %6 = vector.broadcast %5 : vector<1x128xf32> to vector<64x128xf32>
    %7 = arith.addf %4, %6 : vector<64x128xf32>
    %c0_5 = arith.constant 0 : index
    %c0_6 = arith.constant 0 : index
    %8 = vector.load %arg2[%c0_5, %c0_6] : memref<64x128xbf16, #tpu.memory_space<vmem>>, vector<64x128xbf16>
    %9 = arith.extf %8 : vector<64x128xbf16> to vector<64x128xf32>
    %c0_7 = arith.constant 0 : index
    %c0_8 = arith.constant 0 : index
    %10 = vector.load %arg5[%c0_7, %c0_8] : memref<1x128xf32, #tpu.memory_space<vmem>>, vector<1x128xf32>
    %11 = vector.broadcast %10 : vector<1x128xf32> to vector<64x128xf32>
    %12 = arith.mulf %9, %11 : vector<64x128xf32>
    %13 = arith.addf %7, %12 : vector<64x128xf32>
    %c0_9 = arith.constant 0 : index
    %c0_10 = arith.constant 0 : index
    %14 = vector.load %arg6[%c0_9, %c0_10] : memref<64x128xf32, #tpu.memory_space<vmem>>, vector<64x128xf32>
    tpu.vector_store %arg6[%c0_9, %c0_10], %13 {strides = array<i32>} : memref<64x128xf32, #tpu.memory_space<vmem>>, vector<64x128xf32>,
    return
  }
  func.func @transform_0(%arg0: i32) -> (i32, i32) {
    %c0_i32 = arith.constant 0 : i32
    %c0_i32_0 = arith.constant 0 : i32
    return %arg0, %c0_i32 : i32, i32
  }
  func.func @transform_1(%arg0: i32) -> (i32, i32) {
    %c0_i32 = arith.constant 0 : i32
    %c0_i32_0 = arith.constant 0 : i32
    return %arg0, %c0_i32 : i32, i32
  }
  func.func @transform_2(%arg0: i32) -> (i32, i32) {
    %c0_i32 = arith.constant 0 : i32
    %c0_i32_0 = arith.constant 0 : i32
    %c0_i32_1 = arith.constant 0 : i32
    return %c0_i32, %c0_i32_0 : i32, i32
  }
  func.func @transform_3(%arg0: i32) -> (i32, i32) {
    %c0_i32 = arith.constant 0 : i32
    %c0_i32_0 = arith.constant 0 : i32
    %c0_i32_1 = arith.constant 0 : i32
    return %c0_i32, %c0_i32_0 : i32, i32
  }
  func.func @transform_4(%arg0: i32) -> (i32, i32) {
    %c0_i32 = arith.constant 0 : i32
    %c0_i32_0 = arith.constant 0 : i32
    %c0_i32_1 = arith.constant 0 : i32
    return %c0_i32, %c0_i32_0 : i32, i32
  }
  func.func @transform_5(%arg0: i32) -> (i32, i32) {
    %c0_i32 = arith.constant 0 : i32
    %c0_i32_0 = arith.constant 0 : i32
    return %arg0, %c0_i32 : i32, i32
  }
}

module attributes {stable_mosaic.version = 11 : i64} {
  func.func @_bn_res_gate_acc_kernel(%arg0: i32, %arg1: memref<64x128xbf16, #tpu.memory_space<vmem>>, %arg2: memref<64x128xbf16, #tpu.memory_space<vmem>>, %arg3: memref<1x128xf32, #tpu.memory_space<vmem>>, %arg4: memref<1x128xf32, #tpu.memory_space<vmem>>, %arg5: memref<1x128xf32, #tpu.memory_space<vmem>>, %arg6: memref<64x128xf32, #tpu.memory_space<vmem>>, %arg7: memref<64x128xf32, #tpu.memory_space<vmem>>) attributes {dimension_semantics = [#tpu.dimension_semantics<parallel>], iteration_bounds = array<i64: 2>, scalar_prefetch = 0 : i64, scratch_operands = 0 : i64, tpu.core_type = #tpu.core_type<tc>, window_params = [{transform_indices = @transform_0, window_bounds = array<i64: 64, 128>}, {transform_indices = @transform_1, window_bounds = array<i64: 64, 128>}, {pipeline_mode = #tpu.pipeline_mode<synchronous>, transform_indices = @transform_2, window_bounds = array<i64: 1, 128>}, {pipeline_mode = #tpu.pipeline_mode<synchronous>, transform_indices = @transform_3, window_bounds = array<i64: 1, 128>}, {pipeline_mode = #tpu.pipeline_mode<synchronous>, transform_indices = @transform_4, window_bounds = array<i64: 1, 128>}, {transform_indices = @transform_5, window_bounds = array<i64: 64, 128>}, {transform_indices = @transform_6, window_bounds = array<i64: 64, 128>}]} {
    %c0 = arith.constant 0 : index
    %c0_0 = arith.constant 0 : index
    %0 = vector.load %arg6[%c0, %c0_0] : memref<64x128xf32, #tpu.memory_space<vmem>>, vector<64x128xf32>
    %c0_1 = arith.constant 0 : index
    %c0_2 = arith.constant 0 : index
    %1 = vector.load %arg1[%c0_1, %c0_2] : memref<64x128xbf16, #tpu.memory_space<vmem>>, vector<64x128xbf16>
    %2 = arith.extf %1 : vector<64x128xbf16> to vector<64x128xf32>
    %c0_3 = arith.constant 0 : index
    %c0_4 = arith.constant 0 : index
    %3 = vector.load %arg3[%c0_3, %c0_4] : memref<1x128xf32, #tpu.memory_space<vmem>>, vector<1x128xf32>
    %4 = vector.broadcast %3 : vector<1x128xf32> to vector<64x128xf32>
    %5 = arith.mulf %2, %4 : vector<64x128xf32>
    %6 = arith.addf %0, %5 : vector<64x128xf32>
    %c0_5 = arith.constant 0 : index
    %c0_6 = arith.constant 0 : index
    %7 = vector.load %arg4[%c0_5, %c0_6] : memref<1x128xf32, #tpu.memory_space<vmem>>, vector<1x128xf32>
    %8 = vector.broadcast %7 : vector<1x128xf32> to vector<64x128xf32>
    %9 = arith.addf %6, %8 : vector<64x128xf32>
    %c0_7 = arith.constant 0 : index
    %c0_8 = arith.constant 0 : index
    %10 = vector.load %arg2[%c0_7, %c0_8] : memref<64x128xbf16, #tpu.memory_space<vmem>>, vector<64x128xbf16>
    %11 = arith.extf %10 : vector<64x128xbf16> to vector<64x128xf32>
    %c0_9 = arith.constant 0 : index
    %c0_10 = arith.constant 0 : index
    %12 = vector.load %arg5[%c0_9, %c0_10] : memref<1x128xf32, #tpu.memory_space<vmem>>, vector<1x128xf32>
    %13 = vector.broadcast %12 : vector<1x128xf32> to vector<64x128xf32>
    %14 = arith.mulf %11, %13 : vector<64x128xf32>
    %15 = arith.addf %9, %14 : vector<64x128xf32>
    %c0_11 = arith.constant 0 : index
    %c0_12 = arith.constant 0 : index
    %16 = vector.load %arg7[%c0_11, %c0_12] : memref<64x128xf32, #tpu.memory_space<vmem>>, vector<64x128xf32>
    tpu.vector_store %arg7[%c0_11, %c0_12], %15 {strides = array<i32>} : memref<64x128xf32, #tpu.memory_space<vmem>>, vector<64x128xf32>,
    return
  }
  func.func @transform_0(%arg0: i32) -> (i32, i32) {
    %c0_i32 = arith.constant 0 : i32
    %c0_i32_0 = arith.constant 0 : i32
    return %arg0, %c0_i32 : i32, i32
  }
  func.func @transform_1(%arg0: i32) -> (i32, i32) {
    %c0_i32 = arith.constant 0 : i32
    %c0_i32_0 = arith.constant 0 : i32
    return %arg0, %c0_i32 : i32, i32
  }
  func.func @transform_2(%arg0: i32) -> (i32, i32) {
    %c0_i32 = arith.constant 0 : i32
    %c0_i32_0 = arith.constant 0 : i32
    %c0_i32_1 = arith.constant 0 : i32
    return %c0_i32, %c0_i32_0 : i32, i32
  }
  func.func @transform_3(%arg0: i32) -> (i32, i32) {
    %c0_i32 = arith.constant 0 : i32
    %c0_i32_0 = arith.constant 0 : i32
    %c0_i32_1 = arith.constant 0 : i32
    return %c0_i32, %c0_i32_0 : i32, i32
  }
  func.func @transform_4(%arg0: i32) -> (i32, i32) {
    %c0_i32 = arith.constant 0 : i32
    %c0_i32_0 = arith.constant 0 : i32
    %c0_i32_1 = arith.constant 0 : i32
    return %c0_i32, %c0_i32_0 : i32, i32
  }
  func.func @transform_5(%arg0: i32) -> (i32, i32) {
    %c0_i32 = arith.constant 0 : i32
    %c0_i32_0 = arith.constant 0 : i32
    return %arg0, %c0_i32 : i32, i32
  }
  func.func @transform_6(%arg0: i32) -> (i32, i32) {
    %c0_i32 = arith.constant 0 : i32
    %c0_i32_0 = arith.constant 0 : i32
    return %arg0, %c0_i32 : i32, i32
  }
}

</mosaic_0001>

<bundles_post_ra>
// kernel: basic_block_forward.10
= control target key start
LH: loop header
LB: loop body
LE: loop exit
PB: predicated region body
PF: predicated region fallthrough
CT: control target
= control target key end

     0   :  { %s634_s15 = smov 0   ;;  %s665_s0 = inlined_call_operand.vmem [shape: bf16[128,4], index: 0, kind: input, shape index: {}]   ;;  %s666_s1 = inlined_call_operand.vmem [shape: bf16[4,128], index: 1, kind: input, shape index: {}]   ;;  %s667_s2 = inlined_call_operand.vmem [shape: bf16[128,128], index: 2, kind: output, shape index: {0}]   ;;  %s668_s3 = inlined_call_operand.vmem [shape: f32[2,1,128], index: 3, kind: output, shape index: {1}]   ;;  %s669_s4 = inlined_call_operand.vmem [shape: f32[2,1,128], index: 4, kind: output, shape index: {2}]  }
   0x1 LB: > { %s640_s16 = sadd.s32 4294967295, %s607_s15   ;;  %p516_p0 = scmp.ge.s32.totalorder %s607_s15, 1  ;;  %s607_s15 = sphi %s634_s15, %s15_s15  }
   0x2   : > { %p168_p1 = scmp.lt.s32.totalorder %s607_s15, 3 }
   0x4   : > { %p169_p2 = pnand %p516_p0, %p168_p1 }
   0x5   : > { %v227_v0 = vld [vmem:[%s666_s1] sm:$0x3] (!%p169_p2)  ;;  %vm261_vm0 = vcmask (!%p169_p2), 1041408   ;;  %s517_s19 = sshll.u32 (!%p169_p2), %s640_s16, 3  ;;  %vm248_vm1 = vcmask (!%p169_p2), 31744   ;;  %p212_p4 = scmp.lt.s32.totalorder (!%p169_p2), %s640_s16, 1 }
   0x6   : > { %172 = sbr.rel (%p169_p2) target bundleno = 262 (0x106), region = 28  ;;  %587 = vmatprep.subr.msk.bf16.mxu0 (!%p169_p2), %vm261_vm0, %v227_v0  ;;  %v263_v1 = vsel (!%p169_p2), %vm261_vm0, %v227_v0, 0  ;;  %p201_p3 = scmp.lt.s32.totalorder (!%p169_p2), %s517_s19, 15  ;;  %588 = vmatprep.subr.msk.bf16.mxu1 (!%p169_p2), %vm261_vm0, %v227_v0 }
   0x7   : > { %576 = vmatpush3.bf16.msra.mxu0 (!%p169_p2), %v263_v1  ;;  %586 = vmatpush3.bf16.msra.mxu1 (!%p169_p2), %v263_v1 }
   0xd   : > { %s671_s19 = smov (!%p201_p3, %s517_s19), 15  ;;  %s673_s16 = smov (!%p212_p4, %s640_s16), 1 }
   0xe   : > { %s518_s20 = sshll.u32 %s671_s19, 2  ;;  %s214_s29 = scalar_lea.vmem %s668_s3, %s673_s16 }
   0xf   : > { %s204_s23 = scalar_lea.vmem %s665_s0, %s518_s20  ;;  %s210_s26 = scalar_lea.vmem %s667_s2, %s518_s20 }
  0x10   : > { %v597_v2 = vld [vmem:[%s204_s23] sm:$0xff]   ;;  %v598_v3 = vld [vmem:[%s204_s23 + $0x8] sm:$0xff]   ;;  %v599_v4 = vld [vmem:[%s204_s23 + $0x10] sm:$0xff]   ;;  %s217_s6 = scalar_lea.vmem %s669_s4, %s673_s16 }
  0x11   : > { %577 = vmatprep.mubr.msk.bf16.mxu0 %vm248_vm1, %v597_v2  ;;  %v600_v5 = vld [vmem:[%s204_s23 + $0x18] sm:$0xff]   ;;  %581 = vmatprep.mubr.msk.bf16.mxu1 %vm248_vm1, %v599_v4 }
  0x12   : > { %578 = vmatmul.mubr.msk.bf16.vlgmr.msra.gmra.mrb[0].mxu0 %vm248_vm1, %v598_v3  ;;  %582 = vmatmul.mubr.msk.bf16.vlgmr.msra.gmra.mrb[0].mxu1 %vm248_vm1, %v600_v5 }
  0xe5   : > { %v579_v6 = vpop.f32.mrb[0].mxu0  ;;  %v583_v9 = vpop.f32.mrb[0].mxu1 }
  0xe6   : > { %v299_v7 = vpop.f32.mrb[1].mxu0  ;;  %v315_v12 = vpop.f32.mrb[1].mxu1  ;;  %v386_v20 = vmul.f32 %v579_v6, %v579_v6  ;;  %v390_v33 = vmul.f32 %v583_v9, %v583_v9 }
  0xe7   : > { %v580_v8 = vpop.f32.mrb[2].mxu0  ;;  %v384_v13 = vmul.f32 %v299_v7, %v299_v7  ;;  %v584_v17 = vpop.f32.mrb[2].mxu1  ;;  %v388_v27 = vmul.f32 %v315_v12, %v315_v12 }
  0xe8   : > { %v555_v10 = vpack.c.bf16 %v580_v8, %v579_v6  ;;  %v302_v11 = vpop.f32.mrb[3].mxu0  ;;  %v565_v18 = vpack.c.bf16 %v584_v17, %v583_v9  ;;  %v318_v19 = vpop.f32.mrb[3].mxu1  ;;  %v387_v24 = vmul.f32 %v580_v8, %v580_v8  ;;  %v391_v36 = vmul.f32 %v584_v17, %v584_v17 }
  0xe9   : > { %v550_v14 = vpack.c.bf16 %v302_v11, %v299_v7  ;;  %v370_v15 = vadd.f32 %v302_v11, %v299_v7  ;;  %v385_v16 = vmul.f32 %v302_v11, %v302_v11  ;;  %v560_v23 = vpack.c.bf16 %v318_v19, %v315_v12 }
  0xea   : > { %567 = vst [vmem:[%s210_s26 + $0x8] sm:$0xff] %v555_v10   ;;  %569 = vst [vmem:[%s210_s26 + $0x18] sm:$0xff] %v565_v18   ;;  %v389_v32 = vmul.f32 %v318_v19, %v318_v19 }
  0xeb   : > { %551 = vst [vmem:[%s210_s26] sm:$0xff] %v550_v14   ;;  %v371_v21 = vadd.f32 %v579_v6, %v370_v15  ;;  %v392_v22 = vadd.f32 %v385_v16, %v384_v13  ;;  %568 = vst [vmem:[%s210_s26 + $0x10] sm:$0xff] %v560_v23  }
  0xed   : > { %v393_v25 = vadd.f32 %v392_v22, %v386_v20  ;;  %v372_v26 = vadd.f32 %v580_v8, %v371_v21 }
  0xef   : > { %v373_v28 = vadd.f32 %v372_v26, %v315_v12  ;;  %v394_v29 = vadd.f32 %v393_v25, %v387_v24 }
  0xf1   : > { %v395_v30 = vadd.f32 %v394_v29, %v388_v27  ;;  %v374_v31 = vadd.f32 %v373_v28, %v318_v19 }
  0xf3   : > { %v375_v34 = vadd.f32 %v583_v9, %v374_v31  ;;  %v396_v35 = vadd.f32 %v395_v30, %v389_v32 }
  0xf5   : > { %v376_v37 = vadd.f32 %v584_v17, %v375_v34  ;;  %v397_v38 = vadd.f32 %v396_v35, %v390_v33 }
  0xf7   : > { %v377_v39 = vrot.slane %v376_v37, 4  ;;  %v398_v40 = vadd.f32 %v397_v38, %v391_v36 }
  0xf9   : > { %v378_v41 = vadd.f32 %v377_v39, %v376_v37  ;;  %v399_v42 = vrot.slane %v398_v40, 4 }
  0xfb   : > { %v379_v43 = vrot.slane %v378_v41, 2  ;;  %v400_v44 = vadd.f32 %v399_v42, %v398_v40 }
  0xfd   : > { %v380_v45 = vadd.f32 %v379_v43, %v378_v41  ;;  %v401_v46 = vrot.slane %v400_v44, 2 }
  0xff   : > { %v381_v47 = vrot.slane %v380_v45, 1  ;;  %v402_v48 = vadd.f32 %v401_v46, %v400_v44 }
 0x101   : > { %v382_v49 = vadd.f32 %v381_v47, %v380_v45  ;;  %v403_v50 = vrot.slane %v402_v48, 1 }
 0x103   : > { %383 = vst [vmem:[%s214_s29] sm:$0x1] %v382_v49  ;;  %v404_v51 = vadd.f32 %v403_v50, %v402_v48 }
 0x105   : > { %405 = vst [vmem:[%s217_s6] sm:$0x1] %v404_v51 }
 0x106 PF: > { %s15_s15 = sadd.s32 1, %s607_s15  }
 0x107   : > { %p12_p5 = scmp.ge.s32.totalorder %s15_s15, 4  }
 0x109   :  { %14 = sbr.rel (!%p12_p5) target bundleno = 1 (0x1), region = 82 }

// kernel: basic_block_forward.11
= control target key start
LH: loop header
LB: loop body
LE: loop exit
PB: predicated region body
PF: predicated region fallthrough
CT: control target
= control target key end

     0   :  { %s423_s12 = smov 0   ;;  %s449_s0 = inlined_call_operand.vmem [shape: bf16[128,128], index: 0, kind: input, shape index: {}, may-alias: {0,3}]   ;;  %s450_s1 = inlined_call_operand.vmem [shape: f32[1,128], index: 1, kind: input, shape index: {}]   ;;  %s451_s2 = inlined_call_operand.vmem [shape: f32[1,128], index: 2, kind: input, shape index: {}]   ;;  %s452_s3 = inlined_call_operand.vmem [shape: bf16[128,128], index: 3, kind: output, shape index: {}, may-alias: {0,3}]  }
   0x1 LB: > { %s316_s13 = sadd.s32 4294967295, %s401_s12   ;;  %p320_p0 = scmp.ge.s32.totalorder %s401_s12, 1  ;;  %s401_s12 = sphi %s423_s12, %s13_s12  }
   0x2   : > { %p138_p1 = scmp.lt.s32.totalorder %s401_s12, 3 }
   0x4   : > { %p139_p2 = pnand %p320_p0, %p138_p1 }
   0x5   : > { %s321_s14 = sshll.u32 (!%p139_p2), %s316_s13, 3  ;;  %v325_v0 = vld [vmem:[%s450_s1] ss:$0 sm:$0xff] (!%p139_p2) }
   0x6   : > { %142 = sbr.rel (%p139_p2) target bundleno = 27 (0x1b), region = 32  ;;  %p163_p3 = scmp.lt.s32.totalorder (!%p139_p2), %s321_s14, 15  ;;  %v326_v13 = vld [vmem:[%s451_s2] ss:$0 sm:$0xff] (!%p139_p2) }
   0xd   : > { %s454_s14 = smov (!%p163_p3, %s321_s14), 15 }
   0xe   : > { %s322_s15 = sshll.u32 %s454_s14, 2 }
   0xf   : > { %s166_s18 = scalar_lea.vmem %s449_s0, %s322_s15  ;;  %s172_s25 = scalar_lea.vmem %s452_s3, %s322_s15 }
  0x10   : > { %v346_v1 = vld [vmem:[%s166_s18] sm:$0xff]   ;;  %v381_v2 = vld [vmem:[%s166_s18 + $0x8] sm:$0xff]   ;;  %v382_v3 = vld [vmem:[%s166_s18 + $0x10] sm:$0xff]  }
  0x11   : > { %v347_v4 = vunpack.c.l.bf16 %v346_v1  ;;  %v348_v5 = vunpack.c.h.bf16 %v346_v1  ;;  %v351_v6 = vunpack.c.l.bf16 %v381_v2  ;;  %v352_v7 = vunpack.c.h.bf16 %v381_v2  ;;  %v383_v8 = vld [vmem:[%s166_s18 + $0x18] sm:$0xff]  }
  0x12   : > { %v355_v9 = vunpack.c.l.bf16 %v382_v3  ;;  %v356_v10 = vunpack.c.h.bf16 %v382_v3  ;;  %v359_v11 = vunpack.c.l.bf16 %v383_v8  ;;  %v360_v12 = vunpack.c.h.bf16 %v383_v8 }
  0x13   : > { %v197_v14 = vmul.f32 %v347_v4, %v325_v0  ;;  %v198_v15 = vmul.f32 %v348_v5, %v325_v0  ;;  %v199_v16 = vmul.f32 %v351_v6, %v325_v0  ;;  %v200_v17 = vmul.f32 %v352_v7, %v325_v0 }
  0x14   : > { %v201_v18 = vmul.f32 %v355_v9, %v325_v0  ;;  %v202_v19 = vmul.f32 %v356_v10, %v325_v0  ;;  %v203_v20 = vmul.f32 %v359_v11, %v325_v0  ;;  %v204_v21 = vmul.f32 %v360_v12, %v325_v0 }
  0x15   : > { %v212_v22 = vadd.f32 %v326_v13, %v197_v14  ;;  %v213_v23 = vadd.f32 %v326_v13, %v198_v15  ;;  %v214_v24 = vadd.f32 %v326_v13, %v199_v16  ;;  %v215_v25 = vadd.f32 %v326_v13, %v200_v17 }
  0x16   : > { %v216_v26 = vadd.f32 %v326_v13, %v201_v18  ;;  %v217_v27 = vadd.f32 %v326_v13, %v202_v19  ;;  %v218_v28 = vadd.f32 %v326_v13, %v203_v20  ;;  %v219_v29 = vadd.f32 %v326_v13, %v204_v21 }
  0x17   : > { %v364_v30 = vpack.c.bf16 %v213_v23, %v212_v22  ;;  %v369_v31 = vpack.c.bf16 %v215_v25, %v214_v24 }
  0x18   : > { %v374_v32 = vpack.c.bf16 %v217_v27, %v216_v26  ;;  %v379_v33 = vpack.c.bf16 %v219_v29, %v218_v28 }
  0x19   : > { %365 = vst [vmem:[%s172_s25] sm:$0xff] %v364_v30   ;;  %384 = vst [vmem:[%s172_s25 + $0x8] sm:$0xff] %v369_v31  }
  0x1a   : > { %385 = vst [vmem:[%s172_s25 + $0x10] sm:$0xff] %v374_v32   ;;  %386 = vst [vmem:[%s172_s25 + $0x18] sm:$0xff] %v379_v33  }
  0x1b PF: > { %s13_s12 = sadd.s32 1, %s401_s12  }
  0x1c   : > { %p10_p4 = scmp.ge.s32.totalorder %s13_s12, 4  }
  0x1e   :  { %12 = sbr.rel (!%p10_p4) target bundleno = 1 (0x1), region = 62 }

// kernel: basic_block_forward.12
= control target key start
LH: loop header
LB: loop body
LE: loop exit
PB: predicated region body
PF: predicated region fallthrough
CT: control target
= control target key end

     0   :  { %s677_s15 = smov 0   ;;  %s721_s0 = inlined_call_operand.vmem [shape: bf16[128,36], index: 0, kind: input, shape index: {}]   ;;  %s722_s1 = inlined_call_operand.vmem [shape: bf16[36,128], index: 1, kind: input, shape index: {}]   ;;  %s723_s2 = inlined_call_operand.vmem [shape: bf16[128,128], index: 2, kind: output, shape index: {0}]   ;;  %s724_s3 = inlined_call_operand.vmem [shape: f32[2,1,128], index: 3, kind: output, shape index: {1}]   ;;  %s725_s4 = inlined_call_operand.vmem [shape: f32[2,1,128], index: 4, kind: output, shape index: {2}]  }
   0x1 LB: > { %s683_s16 = sadd.s32 4294967295, %s650_s15   ;;  %p543_p0 = scmp.ge.s32.totalorder %s650_s15, 1  ;;  %s650_s15 = sphi %s677_s15, %s15_s15  }
   0x2   : > { %p168_p1 = scmp.lt.s32.totalorder %s650_s15, 3 }
   0x4   : > { %p169_p2 = pnand %p543_p0, %p168_p1 }
   0x5   : > { %v637_v0 = vld [vmem:[%s722_s1] sm:$0xff] (!%p169_p2)   ;;  %v638_v1 = vld [vmem:[%s722_s1 + $0x8] sm:$0xff] (!%p169_p2)   ;;  %s544_s21 = sshll.u32 (!%p169_p2), %s683_s16, 3  ;;  %v639_v2 = vld [vmem:[%s722_s1 + $0x10] ss:$0 sps:$4 sm:$0x33] (!%p169_p2)  }
   0x6   : > { %172 = sbr.rel (%p169_p2) target bundleno = 264 (0x108), region = 28  ;;  %607 = vmatprep.subr.bf16.mxu0 (!%p169_p2), %v637_v0  ;;  %621 = vmatprep.subr.bf16.mxu1 (!%p169_p2), %v637_v0  ;;  %p201_p3 = scmp.lt.s32.totalorder (!%p169_p2), %s544_s21, 15  ;;  %vm280_vm0 = vcmask (!%p169_p2), 1041408   ;;  %vm267_vm1 = vcmask (!%p169_p2), 293888  }
   0x7   : > { %608 = vmatpush3.bf16.msra.mxu0 (!%p169_p2), %v637_v0  ;;  %624 = vmatpush3.bf16.msra.mxu1 (!%p169_p2), %v637_v0  ;;  %v282_v3 = vsel (!%p169_p2), %vm280_vm0, %v639_v2, 0  ;;  %p212_p4 = scmp.lt.s32.totalorder (!%p169_p2), %s683_s16, 1 }
   0x8   : > { %609 = vmatprep.subr.bf16.mxu0 (!%p169_p2), %v638_v1  ;;  %622 = vmatprep.subr.bf16.mxu1 (!%p169_p2), %v638_v1 }
   0xb   : > { %610 = vmatpush3.bf16.msra.mxu0 (!%p169_p2), %v638_v1  ;;  %625 = vmatpush3.bf16.msra.mxu1 (!%p169_p2), %v638_v1 }
   0xc   : > { %627 = vmatprep.subr.msk.bf16.mxu0 (!%p169_p2), %vm280_vm0, %v639_v2  ;;  %628 = vmatprep.subr.msk.bf16.mxu1 (!%p169_p2), %vm280_vm0, %v639_v2 }
   0xd   : > { %s727_s21 = smov (!%p201_p3, %s544_s21), 15  ;;  %s729_s16 = smov (!%p212_p4, %s683_s16), 1 }
   0xe   : > { %s545_s24 = sshll.u32 %s727_s21, 2  ;;  %s214_s7 = scalar_lea.vmem %s724_s3, %s729_s16 }
   0xf   : > { %s204_s27 = scalar_lea.vmem %s721_s0, %s545_s24  ;;  %612 = vmatpush3.bf16.msra.mxu0 %v282_v3  ;;  %626 = vmatpush3.bf16.msra.mxu1 %v282_v3  ;;  %s210_s30 = scalar_lea.vmem %s723_s2, %s545_s24 }
  0x10   : > { %v640_v4 = vld [vmem:[%s204_s27] sm:$0xff]   ;;  %v641_v5 = vld [vmem:[%s204_s27 + $0x8] sm:$0xff]   ;;  %v642_v6 = vld [vmem:[%s204_s27 + $0x10] sm:$0xff]   ;;  %s217_s10 = scalar_lea.vmem %s725_s4, %s729_s16 }
  0x11   : > { %613 = vmatprep.mubr.msk.bf16.mxu0 %vm267_vm1, %v640_v4  ;;  %v643_v7 = vld [vmem:[%s204_s27 + $0x18] sm:$0xff]   ;;  %617 = vmatprep.mubr.msk.bf16.mxu1 %vm267_vm1, %v642_v6 }
  0x12   : > { %614 = vmatmul.mubr.msk.bf16.vlgmr.msra.gmra.mrb[0].mxu0 %vm267_vm1, %v641_v5  ;;  %618 = vmatmul.mubr.msk.bf16.vlgmr.msra.gmra.mrb[0].mxu1 %vm267_vm1, %v643_v7 }
  0xe5   : > { %v615_v8 = vpop.f32.mrb[0].mxu0  ;;  %v619_v9 = vpop.f32.mrb[0].mxu1 }
  0xe6   : > { %v318_v10 = vpop.f32.mrb[1].mxu0  ;;  %v355_v11 = vmax.f32 %v619_v9, 0.0  ;;  %v334_v12 = vpop.f32.mrb[1].mxu1  ;;  %v351_v17 = vmax.f32 %v615_v8, 0.0 }
  0xe7   : > { %v349_v13 = vmax.f32 %v318_v10, 0.0  ;;  %v616_v14 = vpop.f32.mrb[2].mxu0  ;;  %v353_v15 = vmax.f32 %v334_v12, 0.0  ;;  %v620_v16 = vpop.f32.mrb[2].mxu1 }
  0xe8   : > { %v352_v18 = vmax.f32 %v616_v14, 0.0  ;;  %v321_v19 = vpop.f32.mrb[3].mxu0  ;;  %v356_v20 = vmax.f32 %v620_v16, 0.0  ;;  %v337_v21 = vpop.f32.mrb[3].mxu1  ;;  %v413_v31 = vmul.f32 %v351_v17, %v351_v17  ;;  %v417_v43 = vmul.f32 %v355_v11, %v355_v11 }
  0xe9   : > { %v350_v22 = vmax.f32 %v321_v19, 0.0  ;;  %v354_v23 = vmax.f32 %v337_v21, 0.0  ;;  %v411_v24 = vmul.f32 %v349_v13, %v349_v13  ;;  %v415_v37 = vmul.f32 %v353_v15, %v353_v15 }
  0xea   : > { %v585_v25 = vpack.c.bf16 %v352_v18, %v351_v17  ;;  %v595_v26 = vpack.c.bf16 %v356_v20, %v355_v11  ;;  %v414_v34 = vmul.f32 %v352_v18, %v352_v18  ;;  %v418_v46 = vmul.f32 %v356_v20, %v356_v20 }
  0xeb   : > { %v580_v27 = vpack.c.bf16 %v350_v22, %v349_v13  ;;  %v397_v28 = vadd.f32 %v350_v22, %v349_v13  ;;  %v412_v29 = vmul.f32 %v350_v22, %v350_v22  ;;  %v590_v30 = vpack.c.bf16 %v354_v23, %v353_v15 }
  0xec   : > { %597 = vst [vmem:[%s210_s30 + $0x8] sm:$0xff] %v585_v25   ;;  %599 = vst [vmem:[%s210_s30 + $0x18] sm:$0xff] %v595_v26   ;;  %v416_v42 = vmul.f32 %v354_v23, %v354_v23 }
  0xed   : > { %581 = vst [vmem:[%s210_s30] sm:$0xff] %v580_v27   ;;  %v398_v32 = vadd.f32 %v397_v28, %v351_v17  ;;  %v419_v33 = vadd.f32 %v412_v29, %v411_v24  ;;  %598 = vst [vmem:[%s210_s30 + $0x10] sm:$0xff] %v590_v30  }
  0xef   : > { %v420_v35 = vadd.f32 %v419_v33, %v413_v31  ;;  %v399_v36 = vadd.f32 %v398_v32, %v352_v18 }
  0xf1   : > { %v400_v38 = vadd.f32 %v399_v36, %v353_v15  ;;  %v421_v39 = vadd.f32 %v420_v35, %v414_v34 }
  0xf3   : > { %v422_v40 = vadd.f32 %v421_v39, %v415_v37  ;;  %v401_v41 = vadd.f32 %v400_v38, %v354_v23 }
  0xf5   : > { %v402_v44 = vadd.f32 %v401_v41, %v355_v11  ;;  %v423_v45 = vadd.f32 %v422_v40, %v416_v42 }
  0xf7   : > { %v403_v47 = vadd.f32 %v402_v44, %v356_v20  ;;  %v424_v48 = vadd.f32 %v423_v45, %v417_v43 }
  0xf9   : > { %v404_v49 = vrot.slane %v403_v47, 4  ;;  %v425_v50 = vadd.f32 %v424_v48, %v418_v46 }
  0xfb   : > { %v405_v51 = vadd.f32 %v404_v49, %v403_v47  ;;  %v426_v52 = vrot.slane %v425_v50, 4 }
  0xfd   : > { %v406_v53 = vrot.slane %v405_v51, 2  ;;  %v427_v54 = vadd.f32 %v426_v52, %v425_v50 }
  0xff   : > { %v407_v55 = vadd.f32 %v406_v53, %v405_v51  ;;  %v428_v56 = vrot.slane %v427_v54, 2 }
 0x101   : > { %v408_v57 = vrot.slane %v407_v55, 1  ;;  %v429_v58 = vadd.f32 %v428_v56, %v427_v54 }
 0x103   : > { %v409_v59 = vadd.f32 %v408_v57, %v407_v55  ;;  %v430_v60 = vrot.slane %v429_v58, 1 }
 0x105   : > { %410 = vst [vmem:[%s214_s7] sm:$0x1] %v409_v59  ;;  %v431_v61 = vadd.f32 %v430_v60, %v429_v58 }
 0x107   : > { %432 = vst [vmem:[%s217_s10] sm:$0x1] %v431_v61 }
 0x108 PF: > { %s15_s15 = sadd.s32 1, %s650_s15  }
 0x109   : > { %p12_p5 = scmp.ge.s32.totalorder %s15_s15, 4  }
 0x10b   :  { %14 = sbr.rel (!%p12_p5) target bundleno = 1 (0x1), region = 82 }

// kernel: basic_block_forward.13
= control target key start
LH: loop header
LB: loop body
LE: loop exit
PB: predicated region body
PF: predicated region fallthrough
CT: control target
= control target key end

     0   :  { %s647_s18 = smov 0   ;;  %s682_s0 = inlined_call_operand.vmem [shape: bf16[128,128], index: 0, kind: input, shape index: {}, may-alias: {0,4}]   ;;  %s683_s1 = inlined_call_operand.vmem [shape: bf16[128,128], index: 1, kind: input, shape index: {}]   ;;  %s684_s2 = inlined_call_operand.vmem [shape: f32[1,128], index: 2, kind: input, shape index: {}]   ;;  %s685_s3 = inlined_call_operand.vmem [shape: f32[1,128], index: 3, kind: input, shape index: {}]   ;;  %s686_s4 = inlined_call_operand.vmem [shape: bf16[128,128], index: 4, kind: output, shape index: {0}, may-alias: {0,4}]   ;;  %s687_s5 = inlined_call_operand.vmem [shape: bf16[128,128], index: 5, kind: output, shape index: {1}]  }
   0x1 LB: > { %s484_s19 = sadd.s32 4294967295, %s615_s18   ;;  %p488_p0 = scmp.ge.s32.totalorder %s615_s18, 1  ;;  %s615_s18 = sphi %s647_s18, %s16_s18  }
   0x2   : > { %p202_p1 = scmp.lt.s32.totalorder %s615_s18, 3 }
   0x4   : > { %p203_p2 = pnand %p488_p0, %p202_p1 }
   0x5   : > { %s489_s20 = sshll.u32 (!%p203_p2), %s484_s19, 3  ;;  %v497_v0 = vld [vmem:[%s684_s2] ss:$0 sm:$0xff] (!%p203_p2) }
   0x6   : > { %206 = sbr.rel (%p203_p2) target bundleno = 33 (0x21), region = 36  ;;  %p241_p3 = scmp.lt.s32.totalorder (!%p203_p2), %s489_s20, 15  ;;  %v498_v13 = vld [vmem:[%s685_s3] ss:$0 sm:$0xff] (!%p203_p2) }
   0xd   : > { %s689_s20 = smov (!%p241_p3, %s489_s20), 15 }
   0xe   : > { %s655_s21 = sshll.u32 %s689_s20, 2 }
   0xf   : > { %s244_s24 = scalar_lea.vmem %s682_s0, %s655_s21  ;;  %s250_s27 = scalar_lea.vmem %s683_s1, %s655_s21 }
  0x10   : > { %v518_v1 = vld [vmem:[%s244_s24] sm:$0xff]   ;;  %v589_v2 = vld [vmem:[%s244_s24 + $0x8] sm:$0xff]   ;;  %v590_v3 = vld [vmem:[%s244_s24 + $0x10] sm:$0xff]   ;;  %s256_s9 = scalar_lea.vmem %s686_s4, %s655_s21  ;;  %s262_s12 = scalar_lea.vmem %s687_s5, %s655_s21 }
  0x11   : > { %v519_v4 = vunpack.c.l.bf16 %v518_v1  ;;  %v520_v5 = vunpack.c.h.bf16 %v518_v1  ;;  %v523_v6 = vunpack.c.l.bf16 %v589_v2  ;;  %v524_v7 = vunpack.c.h.bf16 %v589_v2  ;;  %v591_v8 = vld [vmem:[%s244_s24 + $0x18] sm:$0xff]   ;;  %v534_v14 = vld [vmem:[%s250_s27] sm:$0xff]   ;;  %v592_v19 = vld [vmem:[%s250_s27 + $0x8] sm:$0xff]  }
  0x12   : > { %v527_v9 = vunpack.c.l.bf16 %v590_v3  ;;  %v528_v10 = vunpack.c.h.bf16 %v590_v3  ;;  %v531_v11 = vunpack.c.l.bf16 %v591_v8  ;;  %v532_v12 = vunpack.c.h.bf16 %v591_v8  ;;  %v593_v28 = vld [vmem:[%s250_s27 + $0x10] sm:$0xff]   ;;  %v594_v29 = vld [vmem:[%s250_s27 + $0x18] sm:$0xff]  }
  0x13   : > { %v287_v15 = vmul.f32 %v519_v4, %v497_v0  ;;  %v288_v16 = vmul.f32 %v520_v5, %v497_v0  ;;  %v289_v17 = vmul.f32 %v523_v6, %v497_v0  ;;  %v290_v18 = vmul.f32 %v524_v7, %v497_v0 }
  0x14   : > { %v291_v20 = vmul.f32 %v527_v9, %v497_v0  ;;  %v292_v21 = vmul.f32 %v528_v10, %v497_v0  ;;  %v293_v22 = vmul.f32 %v531_v11, %v497_v0  ;;  %v294_v23 = vmul.f32 %v532_v12, %v497_v0 }
  0x15   : > { %v302_v24 = vadd.f32 %v498_v13, %v287_v15  ;;  %v303_v25 = vadd.f32 %v498_v13, %v288_v16  ;;  %v535_v26 = vunpack.c.l.bf16 %v534_v14  ;;  %v536_v27 = vunpack.c.h.bf16 %v534_v14 }
  0x16   : > { %v304_v30 = vadd.f32 %v498_v13, %v289_v17  ;;  %v305_v31 = vadd.f32 %v498_v13, %v290_v18  ;;  %v539_v32 = vunpack.c.l.bf16 %v592_v19  ;;  %v540_v33 = vunpack.c.h.bf16 %v592_v19 }
  0x17   : > { %v326_v34 = vadd.f32 %v535_v26, %v302_v24  ;;  %v327_v35 = vadd.f32 %v536_v27, %v303_v25  ;;  %v306_v36 = vadd.f32 %v498_v13, %v291_v20  ;;  %v307_v37 = vadd.f32 %v498_v13, %v292_v21 }
  0x18   : > { %v328_v38 = vadd.f32 %v539_v32, %v304_v30  ;;  %v329_v39 = vadd.f32 %v540_v33, %v305_v31  ;;  %v543_v40 = vunpack.c.l.bf16 %v593_v28  ;;  %v544_v41 = vunpack.c.h.bf16 %v593_v28 }
  0x19   : > { %v552_v42 = vpack.c.bf16 %v327_v35, %v326_v34  ;;  %v308_v43 = vadd.f32 %v498_v13, %v293_v22  ;;  %v309_v44 = vadd.f32 %v498_v13, %v294_v23  ;;  %v547_v45 = vunpack.c.l.bf16 %v594_v29 }
  0x1a   : > { %v557_v46 = vpack.c.bf16 %v329_v39, %v328_v38  ;;  %v330_v47 = vadd.f32 %v543_v40, %v306_v36  ;;  %v331_v48 = vadd.f32 %v544_v41, %v307_v37  ;;  %v548_v49 = vunpack.c.h.bf16 %v594_v29 }
  0x1b   : > { %553 = vst [vmem:[%s256_s9] sm:$0xff] %v552_v42   ;;  %v332_v50 = vadd.f32 %v547_v45, %v308_v43  ;;  %573 = vst [vmem:[%s262_s12] sm:$0xff] %v552_v42  }
  0x1c   : > { %595 = vst [vmem:[%s256_s9 + $0x8] sm:$0xff] %v557_v46   ;;  %v562_v51 = vpack.c.bf16 %v331_v48, %v330_v47  ;;  %v333_v52 = vadd.f32 %v548_v49, %v309_v44  ;;  %598 = vst [vmem:[%s262_s12 + $0x8] sm:$0xff] %v557_v46  }
  0x1e   : > { %596 = vst [vmem:[%s256_s9 + $0x10] sm:$0xff] %v562_v51   ;;  %v567_v53 = vpack.c.bf16 %v333_v52, %v332_v50  ;;  %599 = vst [vmem:[%s262_s12 + $0x10] sm:$0xff] %v562_v51  }
  0x20   : > { %597 = vst [vmem:[%s256_s9 + $0x18] sm:$0xff] %v567_v53   ;;  %600 = vst [vmem:[%s262_s12 + $0x18] sm:$0xff] %v567_v53  }
  0x21 PF: > { %s16_s18 = sadd.s32 1, %s615_s18  }
  0x22   : > { %p13_p4 = scmp.ge.s32.totalorder %s16_s18, 4  }
  0x24   :  { %15 = sbr.rel (!%p13_p4) target bundleno = 1 (0x1), region = 81 }

// kernel: mul.84
= control target key start
LH: loop header
LB: loop body
LE: loop exit
PB: predicated region body
PF: predicated region fallthrough
CT: control target
= control target key end

     0   :  { %s20_s0 = inlined_call_operand.<no memory space> [shape: f32[], index: 0, kind: input, shape index: {}]   ;;  %s21_s1 = inlined_call_operand.vmem [shape: f32[1,128], index: 1, kind: output, shape index: {}]  }
   0x1   :  { %v2_v0 = vstv %s20_s0 }
   0x2   :  { %3 = vst [vmem:[%s21_s1] sm:$0x1] %v2_v0 }

// kernel: basic_block_forward.15
= control target key start
LH: loop header
LB: loop body
LE: loop exit
PB: predicated region body
PF: predicated region fallthrough
CT: control target
= control target key end

     0   :  { %s511_s18 = smov 0   ;;  %s566_s0 = inlined_call_operand.vmem [shape: bf16[128,128], index: 0, kind: input, shape index: {}]   ;;  %s567_s1 = inlined_call_operand.vmem [shape: bf16[128,128], index: 1, kind: input, shape index: {}]   ;;  %s568_s2 = inlined_call_operand.vmem [shape: f32[1,128], index: 2, kind: input, shape index: {}]   ;;  %s569_s3 = inlined_call_operand.vmem [shape: f32[1,128], index: 3, kind: input, shape index: {}]   ;;  %s570_s4 = inlined_call_operand.vmem [shape: f32[1,128], index: 4, kind: input, shape index: {}]   ;;  %s571_s5 = inlined_call_operand.vmem [shape: f32[128,128], index: 5, kind: output, shape index: {}]  }
   0x1 LB: > { %s411_s19 = sadd.s32 4294967295, %s479_s18   ;;  %p415_p0 = scmp.ge.s32.totalorder %s479_s18, 1  ;;  %s479_s18 = sphi %s511_s18, %s15_s18  }
   0x2   : > { %p199_p1 = scmp.lt.s32.totalorder %s479_s18, 3 }
   0x4   : > { %p200_p2 = pnand %p415_p0, %p199_p1 }
   0x5   : > { %s416_s20 = sshll.u32 (!%p200_p2), %s411_s19, 3  ;;  %v422_v0 = vld [vmem:[%s568_s2] ss:$0 sm:$0xff] (!%p200_p2) }
   0x6   : > { %203 = sbr.rel (%p200_p2) target bundleno = 34 (0x22), region = 40  ;;  %p233_p3 = scmp.lt.s32.totalorder (!%p200_p2), %s416_s20, 15  ;;  %v424_v1 = vld [vmem:[%s570_s4] ss:$0 sm:$0xff] (!%p200_p2) }
   0x7   : > { %v423_v10 = vld [vmem:[%s569_s3] ss:$0 sm:$0xff] (!%p200_p2) }
   0xd   : > { %s573_s20 = smov (!%p233_p3, %s416_s20), 15 }
   0xe   : > { %s417_s21 = sshll.u32 %s573_s20, 2  ;;  %s421_s9 = sshll.u32 %s573_s20, 3 }
   0xf   : > { %s525_s24 = scalar_lea.vmem %s566_s0, %s417_s21  ;;  %s530_s27 = scalar_lea.vmem %s567_s1, %s417_s21 }
  0x10   : > { %v428_v2 = vld [vmem:[%s525_s24] sm:$0xff]   ;;  %v459_v4 = vld [vmem:[%s525_s24 + $0x8] sm:$0xff]   ;;  %v460_v15 = vld [vmem:[%s525_s24 + $0x10] sm:$0xff]   ;;  %s551_s12 = scalar_lea.vmem %s571_s5, %s421_s9 }
  0x11   : > { %v444_v3 = vld [vmem:[%s530_s27] sm:$0xff]   ;;  %v429_v5 = vunpack.c.l.bf16 %v428_v2  ;;  %v430_v7 = vunpack.c.h.bf16 %v428_v2  ;;  %v462_v9 = vld [vmem:[%s530_s27 + $0x8] sm:$0xff]   ;;  %v433_v11 = vunpack.c.l.bf16 %v459_v4  ;;  %v434_v13 = vunpack.c.h.bf16 %v459_v4  ;;  %v463_v16 = vld [vmem:[%s530_s27 + $0x10] sm:$0xff]  }
  0x12   : > { %v445_v6 = vunpack.c.l.bf16 %v444_v3  ;;  %v446_v8 = vunpack.c.h.bf16 %v444_v3  ;;  %v449_v12 = vunpack.c.l.bf16 %v462_v9  ;;  %v450_v14 = vunpack.c.h.bf16 %v462_v9  ;;  %v461_v33 = vld [vmem:[%s525_s24 + $0x18] sm:$0xff]  }
  0x13   : > { %v273_v17 = vmul.f32 %v429_v5, %v422_v0  ;;  %v274_v19 = vmul.f32 %v430_v7, %v422_v0  ;;  %v275_v21 = vmul.f32 %v433_v11, %v422_v0  ;;  %v276_v23 = vmul.f32 %v434_v13, %v422_v0  ;;  %v464_v34 = vld [vmem:[%s530_s27 + $0x18] sm:$0xff]  }
  0x14   : > { %v319_v18 = vmul.f32 %v445_v6, %v424_v1  ;;  %v320_v20 = vmul.f32 %v446_v8, %v424_v1  ;;  %v321_v22 = vmul.f32 %v449_v12, %v424_v1  ;;  %v322_v24 = vmul.f32 %v450_v14, %v424_v1 }
  0x15   : > { %v288_v25 = vadd.f32 %v423_v10, %v273_v17  ;;  %v289_v26 = vadd.f32 %v423_v10, %v274_v19  ;;  %v437_v27 = vunpack.c.l.bf16 %v460_v15  ;;  %v453_v28 = vunpack.c.l.bf16 %v463_v16 }
  0x16   : > { %v290_v29 = vadd.f32 %v423_v10, %v275_v21  ;;  %v291_v30 = vadd.f32 %v423_v10, %v276_v23  ;;  %v438_v31 = vunpack.c.h.bf16 %v460_v15  ;;  %v454_v32 = vunpack.c.h.bf16 %v463_v16 }
  0x17   : > { %v327_v35 = vadd.f32 %v319_v18, %v288_v25  ;;  %v328_v36 = vadd.f32 %v320_v20, %v289_v26  ;;  %v277_v37 = vmul.f32 %v437_v27, %v422_v0  ;;  %v323_v38 = vmul.f32 %v453_v28, %v424_v1 }
  0x18   : > { %v329_v39 = vadd.f32 %v321_v22, %v290_v29  ;;  %v330_v40 = vadd.f32 %v322_v24, %v291_v30  ;;  %v278_v41 = vmul.f32 %v438_v31, %v422_v0  ;;  %v324_v42 = vmul.f32 %v454_v32, %v424_v1 }
  0x19   : > { %335 = vst [vmem:[%s551_s12] sm:$0xff] %v327_v35  ;;  %336 = vst [vmem:[%s551_s12 + $0x8] sm:$0xff] %v328_v36  ;;  %v292_v43 = vadd.f32 %v423_v10, %v277_v37  ;;  %v441_v44 = vunpack.c.l.bf16 %v461_v33  ;;  %v457_v45 = vunpack.c.l.bf16 %v464_v34  ;;  %v442_v46 = vunpack.c.h.bf16 %v461_v33 }
  0x1a   : > { %337 = vst [vmem:[%s551_s12 + $0x10] sm:$0xff] %v329_v39  ;;  %338 = vst [vmem:[%s551_s12 + $0x18] sm:$0xff] %v330_v40  ;;  %v293_v47 = vadd.f32 %v423_v10, %v278_v41  ;;  %v458_v48 = vunpack.c.h.bf16 %v464_v34 }
  0x1b   : > { %v331_v49 = vadd.f32 %v323_v38, %v292_v43  ;;  %v279_v50 = vmul.f32 %v441_v44, %v422_v0  ;;  %v325_v51 = vmul.f32 %v457_v45, %v424_v1  ;;  %v280_v52 = vmul.f32 %v442_v46, %v422_v0 }
  0x1c   : > { %v332_v53 = vadd.f32 %v324_v42, %v293_v47  ;;  %v326_v54 = vmul.f32 %v458_v48, %v424_v1 }
  0x1d   : > { %339 = vst [vmem:[%s551_s12 + $0x20] sm:$0xff] %v331_v49  ;;  %v294_v55 = vadd.f32 %v423_v10, %v279_v50  ;;  %v295_v56 = vadd.f32 %v423_v10, %v280_v52 }
  0x1e   : > { %340 = vst [vmem:[%s551_s12 + $0x28] sm:$0xff] %v332_v53 }
  0x1f   : > { %v333_v57 = vadd.f32 %v325_v51, %v294_v55  ;;  %v334_v58 = vadd.f32 %v326_v54, %v295_v56 }
  0x21   : > { %341 = vst [vmem:[%s551_s12 + $0x30] sm:$0xff] %v333_v57  ;;  %342 = vst [vmem:[%s551_s12 + $0x38] sm:$0xff] %v334_v58 }
  0x22 PF: > { %s15_s18 = sadd.s32 1, %s479_s18  }
  0x23   : > { %p12_p4 = scmp.ge.s32.totalorder %s15_s18, 4  }
  0x25   :  { %14 = sbr.rel (!%p12_p4) target bundleno = 1 (0x1), region = 73 }

// kernel: basic_block_forward.14
= control target key start
LH: loop header
LB: loop body
LE: loop exit
PB: predicated region body
PF: predicated region fallthrough
CT: control target
= control target key end

     0   :  { %s707_s15 = smov 0   ;;  %s761_s0 = inlined_call_operand.vmem [shape: bf16[128,72], index: 0, kind: input, shape index: {}]   ;;  %s762_s1 = inlined_call_operand.vmem [shape: bf16[72,128], index: 1, kind: input, shape index: {}]   ;;  %s763_s2 = inlined_call_operand.vmem [shape: bf16[128,128], index: 2, kind: output, shape index: {0}]   ;;  %s764_s3 = inlined_call_operand.vmem [shape: f32[2,1,128], index: 3, kind: output, shape index: {1}]   ;;  %s765_s4 = inlined_call_operand.vmem [shape: f32[2,1,128], index: 4, kind: output, shape index: {2}]  }
   0x1 LB: > { %s713_s16 = sadd.s32 4294967295, %s680_s15   ;;  %p559_p0 = scmp.ge.s32.totalorder %s680_s15, 1  ;;  %s680_s15 = sphi %s707_s15, %s15_s15  }
   0x2   : > { %p168_p1 = scmp.lt.s32.totalorder %s680_s15, 3 }
   0x4   : > { %p169_p2 = pnand %p559_p0, %p168_p1 }
   0x5   : > { %v665_v0 = vld [vmem:[%s762_s1] sm:$0xff] (!%p169_p2)   ;;  %v666_v1 = vld [vmem:[%s762_s1 + $0x8] sm:$0xff] (!%p169_p2)   ;;  %s560_s21 = sshll.u32 (!%p169_p2), %s713_s16, 3  ;;  %v667_v2 = vld [vmem:[%s762_s1 + $0x10] sm:$0xff] (!%p169_p2)   ;;  %vm283_vm0 = vcmask (!%p169_p2), 588800   ;;  %vm296_vm1 = vcmask (!%p169_p2), 1043456  }
   0x6   : > { %172 = sbr.rel (%p169_p2) target bundleno = 272 (0x110), region = 28  ;;  %627 = vmatprep.subr.bf16.mxu0 (!%p169_p2), %v665_v0  ;;  %645 = vmatprep.subr.bf16.mxu1 (!%p169_p2), %v665_v0  ;;  %p201_p3 = scmp.lt.s32.totalorder (!%p169_p2), %s560_s21, 15  ;;  %v668_v3 = vld [vmem:[%s762_s1 + $0x18] sm:$0xff] (!%p169_p2)   ;;  %v669_v6 = vld [vmem:[%s762_s1 + $0x20] ss:$0 sps:$4 sm:$0xff] (!%p169_p2)  }
   0x7   : > { %628 = vmatpush3.bf16.msra.mxu0 (!%p169_p2), %v665_v0  ;;  %650 = vmatpush3.bf16.msra.mxu1 (!%p169_p2), %v665_v0  ;;  %v298_v7 = vsel (!%p169_p2), %vm296_vm1, %v669_v6, 0  ;;  %p212_p4 = scmp.lt.s32.totalorder (!%p169_p2), %s713_s16, 1 }
   0x8   : > { %629 = vmatprep.subr.bf16.mxu0 (!%p169_p2), %v666_v1  ;;  %646 = vmatprep.subr.bf16.mxu1 (!%p169_p2), %v666_v1 }
   0xb   : > { %630 = vmatpush3.bf16.msra.mxu0 (!%p169_p2), %v666_v1  ;;  %651 = vmatpush3.bf16.msra.mxu1 (!%p169_p2), %v666_v1 }
   0xc   : > { %631 = vmatprep.subr.bf16.mxu0 (!%p169_p2), %v667_v2  ;;  %647 = vmatprep.subr.bf16.mxu1 (!%p169_p2), %v667_v2 }
   0xd   : > { %s767_s21 = smov (!%p201_p3, %s560_s21), 15  ;;  %s769_s16 = smov (!%p212_p4, %s713_s16), 1 }
   0xe   : > { %s561_s24 = sshll.u32 %s767_s21, 2  ;;  %s214_s11 = scalar_lea.vmem %s764_s3, %s769_s16 }
   0xf   : > { %s204_s29 = scalar_lea.vmem %s761_s0, %s561_s24  ;;  %632 = vmatpush3.bf16.msra.mxu0 %v667_v2  ;;  %652 = vmatpush3.bf16.msra.mxu1 %v667_v2  ;;  %s210_s8 = scalar_lea.vmem %s763_s2, %s561_s24 }
  0x10   : > { %v670_v4 = vld [vmem:[%s204_s29] sm:$0xff]   ;;  %v672_v5 = vld [vmem:[%s204_s29 + $0x10] sm:$0xff]   ;;  %633 = vmatprep.subr.bf16.mxu0 %v668_v3  ;;  %648 = vmatprep.subr.bf16.mxu1 %v668_v3  ;;  %v671_v8 = vld [vmem:[%s204_s29 + $0x8] sm:$0xff]   ;;  %s217_s14 = scalar_lea.vmem %s765_s4, %s769_s16 }
  0x11   : > { %637 = vmatprep.mubr.msk.bf16.mxu0 %vm283_vm0, %v670_v4  ;;  %641 = vmatprep.mubr.msk.bf16.mxu1 %vm283_vm0, %v672_v5  ;;  %v673_v9 = vld [vmem:[%s204_s29 + $0x18] sm:$0xff]  }
  0x13   : > { %634 = vmatpush3.bf16.msra.mxu0 %v668_v3  ;;  %653 = vmatpush3.bf16.msra.mxu1 %v668_v3 }
  0x14   : > { %655 = vmatprep.subr.msk.bf16.mxu0 %vm296_vm1, %v669_v6  ;;  %656 = vmatprep.subr.msk.bf16.mxu1 %vm296_vm1, %v669_v6 }
  0x17   : > { %636 = vmatpush3.bf16.msra.mxu0 %v298_v7  ;;  %654 = vmatpush3.bf16.msra.mxu1 %v298_v7 }
  0x1a   : > { %638 = vmatmul.mubr.msk.bf16.vlgmr.msra.gmra.mrb[0].mxu0 %vm283_vm0, %v671_v8  ;;  %642 = vmatmul.mubr.msk.bf16.vlgmr.msra.gmra.mrb[0].mxu1 %vm283_vm0, %v673_v9 }
  0xed   : > { %v639_v10 = vpop.f32.mrb[0].mxu0  ;;  %v643_v11 = vpop.f32.mrb[0].mxu1 }
  0xee   : > { %v334_v12 = vpop.f32.mrb[1].mxu0  ;;  %v371_v13 = vmax.f32 %v643_v11, 0.0  ;;  %v350_v14 = vpop.f32.mrb[1].mxu1  ;;  %v367_v19 = vmax.f32 %v639_v10, 0.0 }
  0xef   : > { %v365_v15 = vmax.f32 %v334_v12, 0.0  ;;  %v640_v16 = vpop.f32.mrb[2].mxu0  ;;  %v369_v17 = vmax.f32 %v350_v14, 0.0  ;;  %v644_v18 = vpop.f32.mrb[2].mxu1 }
  0xf0   : > { %v368_v20 = vmax.f32 %v640_v16, 0.0  ;;  %v337_v21 = vpop.f32.mrb[3].mxu0  ;;  %v372_v22 = vmax.f32 %v644_v18, 0.0  ;;  %v353_v23 = vpop.f32.mrb[3].mxu1  ;;  %v429_v33 = vmul.f32 %v367_v19, %v367_v19  ;;  %v433_v45 = vmul.f32 %v371_v13, %v371_v13 }
  0xf1   : > { %v366_v24 = vmax.f32 %v337_v21, 0.0  ;;  %v370_v25 = vmax.f32 %v353_v23, 0.0  ;;  %v427_v26 = vmul.f32 %v365_v15, %v365_v15  ;;  %v431_v39 = vmul.f32 %v369_v17, %v369_v17 }
  0xf2   : > { %v603_v27 = vpack.c.bf16 %v368_v20, %v367_v19  ;;  %v613_v28 = vpack.c.bf16 %v372_v22, %v371_v13  ;;  %v430_v36 = vmul.f32 %v368_v20, %v368_v20  ;;  %v434_v48 = vmul.f32 %v372_v22, %v372_v22 }
  0xf3   : > { %v598_v29 = vpack.c.bf16 %v366_v24, %v365_v15  ;;  %v413_v30 = vadd.f32 %v366_v24, %v365_v15  ;;  %v428_v31 = vmul.f32 %v366_v24, %v366_v24  ;;  %v608_v32 = vpack.c.bf16 %v370_v25, %v369_v17 }
  0xf4   : > { %615 = vst [vmem:[%s210_s8 + $0x8] sm:$0xff] %v603_v27   ;;  %617 = vst [vmem:[%s210_s8 + $0x18] sm:$0xff] %v613_v28   ;;  %v432_v44 = vmul.f32 %v370_v25, %v370_v25 }
  0xf5   : > { %599 = vst [vmem:[%s210_s8] sm:$0xff] %v598_v29   ;;  %v414_v34 = vadd.f32 %v413_v30, %v367_v19  ;;  %v435_v35 = vadd.f32 %v428_v31, %v427_v26  ;;  %616 = vst [vmem:[%s210_s8 + $0x10] sm:$0xff] %v608_v32  }
  0xf7   : > { %v436_v37 = vadd.f32 %v435_v35, %v429_v33  ;;  %v415_v38 = vadd.f32 %v414_v34, %v368_v20 }
  0xf9   : > { %v416_v40 = vadd.f32 %v415_v38, %v369_v17  ;;  %v437_v41 = vadd.f32 %v436_v37, %v430_v36 }
  0xfb   : > { %v438_v42 = vadd.f32 %v437_v41, %v431_v39  ;;  %v417_v43 = vadd.f32 %v416_v40, %v370_v25 }
  0xfd   : > { %v418_v46 = vadd.f32 %v417_v43, %v371_v13  ;;  %v439_v47 = vadd.f32 %v438_v42, %v432_v44 }
  0xff   : > { %v419_v49 = vadd.f32 %v418_v46, %v372_v22  ;;  %v440_v50 = vadd.f32 %v439_v47, %v433_v45 }
 0x101   : > { %v420_v51 = vrot.slane %v419_v49, 4  ;;  %v441_v52 = vadd.f32 %v440_v50, %v434_v48 }
 0x103   : > { %v421_v53 = vadd.f32 %v420_v51, %v419_v49  ;;  %v442_v54 = vrot.slane %v441_v52, 4 }
 0x105   : > { %v422_v55 = vrot.slane %v421_v53, 2  ;;  %v443_v56 = vadd.f32 %v442_v54, %v441_v52 }
 0x107   : > { %v423_v57 = vadd.f32 %v422_v55, %v421_v53  ;;  %v444_v58 = vrot.slane %v443_v56, 2 }
 0x109   : > { %v424_v59 = vrot.slane %v423_v57, 1  ;;  %v445_v60 = vadd.f32 %v444_v58, %v443_v56 }
 0x10b   : > { %v425_v61 = vadd.f32 %v424_v59, %v423_v57  ;;  %v446_v62 = vrot.slane %v445_v60, 1 }
 0x10d   : > { %426 = vst [vmem:[%s214_s11] sm:$0x1] %v425_v61  ;;  %v447_v63 = vadd.f32 %v446_v62, %v445_v60 }
 0x10f   : > { %448 = vst [vmem:[%s217_s14] sm:$0x1] %v447_v63 }
 0x110 PF: > { %s15_s15 = sadd.s32 1, %s680_s15  }
 0x111   : > { %p12_p5 = scmp.ge.s32.totalorder %s15_s15, 4  }
 0x113   :  { %14 = sbr.rel (!%p12_p5) target bundleno = 1 (0x1), region = 82 }

// kernel: basic_block_forward.19
= control target key start
LH: loop header
LB: loop body
LE: loop exit
PB: predicated region body
PF: predicated region fallthrough
CT: control target
= control target key end

     0   :  { %s595_s21 = smov 0   ;;  %s641_s0 = inlined_call_operand.vmem [shape: bf16[128,128], index: 0, kind: input, shape index: {}]   ;;  %s642_s1 = inlined_call_operand.vmem [shape: bf16[128,128], index: 1, kind: input, shape index: {}]   ;;  %s643_s2 = inlined_call_operand.vmem [shape: f32[1,128], index: 2, kind: input, shape index: {}]   ;;  %s644_s3 = inlined_call_operand.vmem [shape: f32[1,128], index: 3, kind: input, shape index: {}]   ;;  %s645_s4 = inlined_call_operand.vmem [shape: f32[1,128], index: 4, kind: input, shape index: {}]   ;;  %s646_s5 = inlined_call_operand.vmem [shape: f32[128,128], index: 5, kind: input, shape index: {}, may-alias: {5,6}]   ;;  %s647_s6 = inlined_call_operand.vmem [shape: f32[128,128], index: 6, kind: output, shape index: {}, may-alias: {5,6}]  }
   0x1 LB: > { %s488_s22 = sadd.s32 4294967295, %s558_s21   ;;  %p492_p0 = scmp.ge.s32.totalorder %s558_s21, 1  ;;  %s558_s21 = sphi %s595_s21, %s16_s21  }
   0x2   : > { %p235_p1 = scmp.lt.s32.totalorder %s558_s21, 3 }
   0x4   : > { %p236_p2 = pnand %p492_p0, %p235_p1 }
   0x5   : > { %s493_s23 = sshll.u32 (!%p236_p2), %s488_s22, 3  ;;  %v501_v0 = vld [vmem:[%s643_s2] ss:$0 sm:$0xff] (!%p236_p2) }
   0x6   : > { %239 = sbr.rel (%p236_p2) target bundleno = 35 (0x23), region = 44  ;;  %p276_p3 = scmp.lt.s32.totalorder (!%p236_p2), %s493_s23, 15  ;;  %v502_v25 = vld [vmem:[%s644_s3] ss:$0 sm:$0xff] (!%p236_p2) }
   0x7   : > { %v503_v48 = vld [vmem:[%s645_s4] ss:$0 sm:$0xff] (!%p236_p2) }
   0xd   : > { %s649_s23 = smov (!%p276_p3, %s493_s23), 15 }
   0xe   : > { %s494_s24 = sshll.u32 %s649_s23, 2  ;;  %s498_s25 = sshll.u32 %s649_s23, 3 }
   0xf   : > { %s279_s28 = scalar_lea.vmem %s641_s0, %s494_s24  ;;  %s291_s9 = scalar_lea.vmem %s646_s5, %s498_s25 }
  0x10   : > { %v507_v1 = vld [vmem:[%s279_s28] sm:$0xff]   ;;  %v538_v2 = vld [vmem:[%s279_s28 + $0x8] sm:$0xff]   ;;  %v539_v3 = vld [vmem:[%s279_s28 + $0x10] sm:$0xff]   ;;  %s621_s12 = scalar_lea.vmem %s642_s1, %s494_s24  ;;  %s297_s19 = scalar_lea.vmem %s647_s6, %s498_s25 }
  0x11   : > { %v299_v4 = vld [vmem:[%s291_s9] sm:$0xff]  ;;  %v508_v5 = vunpack.c.l.bf16 %v507_v1  ;;  %v509_v6 = vunpack.c.h.bf16 %v507_v1  ;;  %v512_v7 = vunpack.c.l.bf16 %v538_v2  ;;  %v513_v8 = vunpack.c.h.bf16 %v538_v2  ;;  %v300_v9 = vld [vmem:[%s291_s9 + $0x8] sm:$0xff]  ;;  %v301_v10 = vld [vmem:[%s291_s9 + $0x10] sm:$0xff] }
  0x12   : > { %v302_v11 = vld [vmem:[%s291_s9 + $0x18] sm:$0xff]  ;;  %v516_v12 = vunpack.c.l.bf16 %v539_v3  ;;  %v517_v13 = vunpack.c.h.bf16 %v539_v3  ;;  %v303_v14 = vld [vmem:[%s291_s9 + $0x20] sm:$0xff]  ;;  %v304_v15 = vld [vmem:[%s291_s9 + $0x28] sm:$0xff] }
  0x13   : > { %v540_v16 = vld [vmem:[%s279_s28 + $0x18] sm:$0xff]   ;;  %v330_v17 = vmul.f32 %v508_v5, %v501_v0  ;;  %v331_v18 = vmul.f32 %v509_v6, %v501_v0  ;;  %v332_v19 = vmul.f32 %v512_v7, %v501_v0  ;;  %v333_v20 = vmul.f32 %v513_v8, %v501_v0  ;;  %v305_v26 = vld [vmem:[%s291_s9 + $0x30] sm:$0xff]  ;;  %v523_v36 = vld [vmem:[%s621_s12] sm:$0xff]  }
  0x14   : > { %v520_v21 = vunpack.c.l.bf16 %v540_v16  ;;  %v521_v22 = vunpack.c.h.bf16 %v540_v16  ;;  %v334_v23 = vmul.f32 %v516_v12, %v501_v0  ;;  %v335_v24 = vmul.f32 %v517_v13, %v501_v0  ;;  %v306_v27 = vld [vmem:[%s291_s9 + $0x38] sm:$0xff]  ;;  %v541_v37 = vld [vmem:[%s621_s12 + $0x8] sm:$0xff]   ;;  %v542_v42 = vld [vmem:[%s621_s12 + $0x10] sm:$0xff]  }
  0x15   : > { %v338_v28 = vadd.f32 %v330_v17, %v299_v4  ;;  %v339_v29 = vadd.f32 %v331_v18, %v300_v9  ;;  %v340_v30 = vadd.f32 %v332_v19, %v301_v10  ;;  %v341_v31 = vadd.f32 %v333_v20, %v302_v11  ;;  %v543_v47 = vld [vmem:[%s621_s12 + $0x18] sm:$0xff]  }
  0x16   : > { %v336_v32 = vmul.f32 %v520_v21, %v501_v0  ;;  %v337_v33 = vmul.f32 %v521_v22, %v501_v0  ;;  %v342_v34 = vadd.f32 %v334_v23, %v303_v14  ;;  %v343_v35 = vadd.f32 %v335_v24, %v304_v15 }
  0x17   : > { %v353_v38 = vadd.f32 %v502_v25, %v338_v28  ;;  %v354_v39 = vadd.f32 %v502_v25, %v339_v29  ;;  %v355_v40 = vadd.f32 %v502_v25, %v340_v30  ;;  %v356_v41 = vadd.f32 %v502_v25, %v341_v31 }
  0x18   : > { %v344_v43 = vadd.f32 %v336_v32, %v305_v26  ;;  %v345_v44 = vadd.f32 %v337_v33, %v306_v27  ;;  %v357_v45 = vadd.f32 %v502_v25, %v342_v34  ;;  %v358_v46 = vadd.f32 %v502_v25, %v343_v35 }
  0x19   : > { %v524_v49 = vunpack.c.l.bf16 %v523_v36  ;;  %v525_v50 = vunpack.c.h.bf16 %v523_v36  ;;  %v528_v51 = vunpack.c.l.bf16 %v541_v37  ;;  %v529_v52 = vunpack.c.h.bf16 %v541_v37 }
  0x1a   : > { %v359_v53 = vadd.f32 %v502_v25, %v344_v43  ;;  %v360_v54 = vadd.f32 %v502_v25, %v345_v44  ;;  %v532_v55 = vunpack.c.l.bf16 %v542_v42  ;;  %v533_v56 = vunpack.c.h.bf16 %v542_v42 }
  0x1b   : > { %v536_v57 = vunpack.c.l.bf16 %v543_v47  ;;  %v537_v58 = vunpack.c.h.bf16 %v543_v47  ;;  %v384_v59 = vmul.f32 %v524_v49, %v503_v48  ;;  %v385_v60 = vmul.f32 %v525_v50, %v503_v48 }
  0x1c   : > { %v386_v61 = vmul.f32 %v528_v51, %v503_v48  ;;  %v387_v62 = vmul.f32 %v529_v52, %v503_v48  ;;  %v388_v63 = vmul.f32 %v532_v55, %v503_v48  ;;  %v389_v0 = vmul.f32 %v533_v56, %v503_v48 }
  0x1d   : > { %v390_v1 = vmul.f32 %v536_v57, %v503_v48  ;;  %v391_v2 = vmul.f32 %v537_v58, %v503_v48  ;;  %v392_v3 = vadd.f32 %v384_v59, %v353_v38  ;;  %v393_v4 = vadd.f32 %v385_v60, %v354_v39 }
  0x1e   : > { %v394_v5 = vadd.f32 %v386_v61, %v355_v40  ;;  %v395_v6 = vadd.f32 %v387_v62, %v356_v41  ;;  %v396_v7 = vadd.f32 %v388_v63, %v357_v45  ;;  %v397_v8 = vadd.f32 %v389_v0, %v358_v46 }
  0x1f   : > { %v398_v9 = vadd.f32 %v390_v1, %v359_v53  ;;  %v399_v10 = vadd.f32 %v391_v2, %v360_v54  ;;  %400 = vst [vmem:[%s297_s19] sm:$0xff] %v392_v3  ;;  %401 = vst [vmem:[%s297_s19 + $0x8] sm:$0xff] %v393_v4 }
  0x20   : > { %402 = vst [vmem:[%s297_s19 + $0x10] sm:$0xff] %v394_v5  ;;  %403 = vst [vmem:[%s297_s19 + $0x18] sm:$0xff] %v395_v6 }
  0x21   : > { %404 = vst [vmem:[%s297_s19 + $0x20] sm:$0xff] %v396_v7  ;;  %405 = vst [vmem:[%s297_s19 + $0x28] sm:$0xff] %v397_v8 }
  0x22   : > { %406 = vst [vmem:[%s297_s19 + $0x30] sm:$0xff] %v398_v9  ;;  %407 = vst [vmem:[%s297_s19 + $0x38] sm:$0xff] %v399_v10 }
  0x23 PF: > { %s16_s21 = sadd.s32 1, %s558_s21  }
  0x24   : > { %p13_p4 = scmp.ge.s32.totalorder %s16_s21, 4  }
  0x26   :  { %15 = sbr.rel (!%p13_p4) target bundleno = 1 (0x1), region = 80 }

</bundles_post_ra>
